<compile_context>
chip_gen: v7x
topology: tpu7x:2x2x1
jax: 0.10.0
libtpu: 0.0.40
codegen_flags: <defaults>
</compile_context>

<pallas_src>
import math
import functools

import jax
import jax.numpy as jnp
from jax.experimental import pallas as pl
from jax.experimental.pallas import tpu as pltpu


# ----------------------------------------------------------------------------
# in-kernel helpers
# ----------------------------------------------------------------------------

def _layernorm(x, gamma, beta, eps=1e-5):
    mean = jnp.mean(x, axis=-1, keepdims=True)
    var = jnp.mean((x - mean) ** 2, axis=-1, keepdims=True)
    return (x - mean) * jax.lax.rsqrt(var + eps) * gamma + beta


# ----------------------------------------------------------------------------
# kernel 1: fused QKV projection + head split (runs ONCE per token)
# ----------------------------------------------------------------------------

def qkv_proj_kernel(x_ref, wq_ref, wk_ref, wv_ref, bqkv_ref,
                    q_ref, k_ref, v_ref, *, nhead):
    x = x_ref[0].astype(jnp.bfloat16)                     # (T, D)
    T, D = x.shape
    hd = D // nhead

    bq = bqkv_ref[0:1, :]                                  # (1, D) f32
    bk = bqkv_ref[1:2, :]
    bv = bqkv_ref[2:3, :]

    # bf16 MXU matmuls, f32 accumulation; wq/bq carry the folded 1/sqrt(hd).
    q = jnp.dot(x, wq_ref[...], preferred_element_type=jnp.float32) + bq
    k = jnp.dot(x, wk_ref[...], preferred_element_type=jnp.float32) + bk
    v = jnp.dot(x, wv_ref[...], preferred_element_type=jnp.float32) + bv

    def heads(a):                                          # (T, D) -> (H, T, hd)
        return a.reshape(T, nhead, hd).transpose(1, 0, 2).astype(jnp.bfloat16)

    q_ref[0] = heads(q)
    k_ref[0] = heads(k)
    v_ref[0] = heads(v)


# ----------------------------------------------------------------------------
# kernel 2: flash attention (online softmax over KV tiles) + out-proj
#           + residual/LN1 + FFN + residual/LN2
# ----------------------------------------------------------------------------

def attn_ffn_kernel(xq_ref, q_ref, k_ref, v_ref,
                    wo_ref, w1_ref, w2_ref, b1_ref, pvec_ref,
                    out_ref,
                    m_scr, l_scr, acc_scr):
    kv = pl.program_id(2)

    @pl.when(kv == 0)
    def _():
        m_scr[...] = jnp.full(m_scr.shape, -jnp.inf, dtype=m_scr.dtype)
        l_scr[...] = jnp.zeros(l_scr.shape, dtype=l_scr.dtype)
        acc_scr[...] = jnp.zeros(acc_scr.shape, dtype=acc_scr.dtype)

    qh = q_ref[0]                                          # (H, TS, hd) bf16, pre-scaled
    kh = k_ref[0]                                          # (H, TK, hd) bf16
    vh = v_ref[0]                                          # (H, TK, hd) bf16

    s = jnp.einsum('hqd,hkd->hqk', qh, kh,
                   preferred_element_type=jnp.float32)     # (H, TS, TK) f32
    m_prev = m_scr[...]
    m_new = jnp.maximum(m_prev, jnp.max(s, axis=-1, keepdims=True))
    alpha = jnp.exp(m_prev - m_new)
    p = jnp.exp(s - m_new)
    l_scr[...] = alpha * l_scr[...] + jnp.sum(p, axis=-1, keepdims=True)
    acc_scr[...] = alpha * acc_scr[...] + jnp.einsum(
        'hqk,hkd->hqd', p.astype(jnp.bfloat16), vh,
        preferred_element_type=jnp.float32)
    m_scr[...] = m_new

    @pl.when(kv == pl.num_programs(2) - 1)
    def _():
        xq = xq_ref[0]                                     # (TS, D) f32, residual path
        wo, w1, w2, b1 = wo_ref[...], w1_ref[...], w2_ref[...], b1_ref[...]
        bo, b2 = pvec_ref[0:1, :], pvec_ref[1:2, :]
        g1, be1 = pvec_ref[2:3, :], pvec_ref[3:4, :]
        g2, be2 = pvec_ref[4:5, :], pvec_ref[5:6, :]

        o = acc_scr[...] * pl.reciprocal(l_scr[...], approx=True)   # (H, TS, hd)
        H_, TS_, hd_ = o.shape
        attn = o.transpose(1, 0, 2).reshape(TS_, H_ * hd_)          # (TS, D)
        attn = jnp.dot(attn.astype(jnp.bfloat16), wo,
                       preferred_element_type=jnp.float32) + bo

        # residual + layernorm1 (dropout is identity in eval mode)
        y = _layernorm(xq + attn, g1, be1)

        # feed-forward
        h1 = jnp.dot(y.astype(jnp.bfloat16), w1,
                     preferred_element_type=jnp.float32) + b1
        h1 = jnp.maximum(h1, 0.0)
        ff = jnp.dot(h1.astype(jnp.bfloat16), w2,
                     preferred_element_type=jnp.float32) + b2

        # residual + layernorm2
        out_ref[0] = _layernorm(y + ff, g2, be2).astype(out_ref.dtype)


# ----------------------------------------------------------------------------
# tiling / VMEM budgeting (generation-aware)
# ----------------------------------------------------------------------------

def _vmem_capacity_bytes():
    try:
        info = pltpu.get_tpu_info()
        cap = getattr(info, "vmem_capacity_bytes", None)
        if cap:
            return int(cap)
    except Exception:
        pass
    return 64 * 1024 * 1024          # conservative fallback (v7x per-TC VMEM)


def _pick_tile(S, max_tile):
    """Largest tile <= max_tile dividing S, preferring multiples of 128."""
    if S <= max_tile:
        return S
    start = max_tile - (max_tile % 128)
    for ts in range(start, 127, -128):          # full MXU rows, unmasked stores
        if S % ts == 0:
            return ts
    for ts in range(max_tile, 7, -8):
        if S % ts == 0:
            return ts
    return S


def _main_vmem_bytes(TS, TK, D, F, H):
    bf16, f32 = 2, 4
    hd = D // H
    stream = 2 * (TS * D * f32                 # xq tile (double-buffered)
                  + H * TS * hd * bf16         # q tile
                  + 2 * H * TK * hd * bf16     # k, v tiles
                  + TS * D * f32)              # out tile
    weights = (D * D + 2 * D * F) * bf16 + (6 * D + F) * f32   # single-buffered
    scratch = (2 * H * TS + H * TS * hd) * f32
    inter = (2 * H * TS * TK + TS * F + 4 * TS * D) * f32      # scores/exp/FFN temps
    return stream + weights + scratch + inter


def _proj_vmem_bytes(T, D, H):
    bf16, f32 = 2, 4
    hd = D // H
    stream = 2 * (T * D * f32 + 3 * H * T * hd * bf16)
    weights = 3 * D * D * bf16 + 3 * D * f32
    inter = 6 * T * D * f32
    return stream + weights + inter


def _vmem_limit_bytes(estimate, cap):
    want = max(int(1.5 * estimate), 32 * 1024 * 1024)
    return max(min(want, int(0.85 * cap)), 1 * 1024 * 1024)


def _choose_tiles(S, D, F, H, cap):
    budget = int(0.8 * cap)
    # 128 MiB chips (v5e/v6e) can afford bigger query tiles than 64 MiB v7x.
    max_q = 512 if cap >= 96 * 1024 * 1024 else 256
    TS = _pick_tile(S, max_q)
    TK = _pick_tile(S, 512)
    while _main_vmem_bytes(TS, TK, D, F, H) > budget:
        if TK >= TS and TK > 128 and TK % 2 == 0 and S % (TK // 2) == 0:
            TK //= 2
        elif TS > 128 and TS % 2 == 0 and S % (TS // 2) == 0:
            TS //= 2
        else:
            break
    return TS, TK


# ----------------------------------------------------------------------------
# wrappers
# ----------------------------------------------------------------------------

def _const_spec(shape, n_idx, single_buffer):
    if n_idx == 2:
        index_map = lambda b, t: (0,) * len(shape)
    else:
        index_map = lambda b, t, k: (0,) * len(shape)
    if single_buffer:
        # grid-invariant operand -> no benefit from double buffering
        return pl.BlockSpec(shape, index_map, pipeline_mode=pl.Buffered(1))
    return pl.BlockSpec(shape, index_map)


def _forward(x, params, *, nhead, q_tile=None, kv_tile=None,
             single_buffer_weights=True):
    B, S, D = x.shape
    H = nhead
    assert D % H == 0
    hd = D // H
    F = params["w1_t"].shape[1]

    cap = _vmem_capacity_bytes()
    TS, TK = _choose_tiles(S, D, F, H, cap)
    if q_tile is not None:
        TS = q_tile
    if kv_tile is not None:
        TK = kv_tile
    assert S % TS == 0 and S % TK == 0
    TP = TS                                                # projection row tile

    # ---- pass 1: QKV projection + head split, once per token ---------------
    head_sds = jax.ShapeDtypeStruct((B, H, S, hd), jnp.bfloat16)
    head_out_spec = pl.BlockSpec((1, H, TP, hd), lambda b, t: (b, 0, t, 0))
    proj_limit = _vmem_limit_bytes(_proj_vmem_bytes(TP, D, H), cap)

    q, k, v = pl.pallas_call(
        functools.partial(qkv_proj_kernel, nhead=H),
        out_shape=(head_sds, head_sds, head_sds),
        grid_spec=pltpu.PrefetchScalarGridSpec(
            num_scalar_prefetch=0,
            grid=(B, S // TP),
            in_specs=[
                pl.BlockSpec((1, TP, D), lambda b, t: (b, t, 0)),
                _const_spec((D, D), 2, single_buffer_weights),   # wq_t (scaled)
                _const_spec((D, D), 2, single_buffer_weights),   # wk_t
                _const_spec((D, D), 2, single_buffer_weights),   # wv_t
                _const_spec((3, D), 2, single_buffer_weights),   # [bq*s, bk, bv]
            ],
            out_specs=(head_out_spec, head_out_spec, head_out_spec),
        ),
        compiler_params=pltpu.CompilerParams(
            dimension_semantics=("parallel", "parallel"),
            vmem_limit_bytes=proj_limit),
    )(x, params["wq_t"], params["wk_t"], params["wv_t"], params["bqkv"])

    # ---- pass 2: flash attention + out-proj + LN1 + FFN + LN2 ---------------
    main_limit = _vmem_limit_bytes(_main_vmem_bytes(TS, TK, D, F, H), cap)

    return pl.pallas_call(
        attn_ffn_kernel,
        out_shape=jax.ShapeDtypeStruct((B, S, D), jnp.float32),
        grid_spec=pltpu.PrefetchScalarGridSpec(
            num_scalar_prefetch=0,
            grid=(B, S // TS, S // TK),
            in_specs=[
                pl.BlockSpec((1, TS, D), lambda b, t, kv: (b, t, 0)),       # xq
                pl.BlockSpec((1, H, TS, hd), lambda b, t, kv: (b, 0, t, 0)),   # q
                pl.BlockSpec((1, H, TK, hd), lambda b, t, kv: (b, 0, kv, 0)),  # k
                pl.BlockSpec((1, H, TK, hd), lambda b, t, kv: (b, 0, kv, 0)),  # v
                _const_spec((D, D), 3, single_buffer_weights),   # wo_t
                _const_spec((D, F), 3, single_buffer_weights),   # w1_t
                _const_spec((F, D), 3, single_buffer_weights),   # w2_t
                _const_spec((1, F), 3, single_buffer_weights),   # b1
                _const_spec((6, D), 3, single_buffer_weights),   # bo,b2,g1,be1,g2,be2
            ],
            out_specs=pl.BlockSpec((1, TS, D), lambda b, t, kv: (b, t, 0)),
            scratch_shapes=[
                pltpu.VMEM((H, TS, 1), jnp.float32),   # running max
                pltpu.VMEM((H, TS, 1), jnp.float32),   # running denom
                pltpu.VMEM((H, TS, hd), jnp.float32),  # output accumulator
            ],
        ),
        compiler_params=pltpu.CompilerParams(
            dimension_semantics=("parallel", "parallel", "arbitrary"),
            vmem_limit_bytes=main_limit),
    )(x, q, k, v, params["wo_t"], params["w1_t"], params["w2_t"],
      params["b1"], params["pvec"])


def transformer_block(x, params, *, nhead, q_tile=None, kv_tile=None):
    """x: (B, S, D) float32; params from prepare_params(). Returns (B, S, D) f32."""
    try:
        return _forward(x, params, nhead=nhead, q_tile=q_tile, kv_tile=kv_tile,
                        single_buffer_weights=True)
    except Exception:
        # TODO(synk): fall back to default double-buffered weight BlockSpecs if
        # this JAX build rejects pl.Buffered(1) single-buffering.
        return _forward(x, params, nhead=nhead, q_tile=q_tile, kv_tile=kv_tile,
                        single_buffer_weights=False)


# -------------------- parameter handling --------------------

def init_params(key, d_model, nhead, dim_feedforward):
    """Parameters in PyTorch storage layout (row-major nn.Linear weights)."""
    D, F = d_model, dim_feedforward
    ks = jax.random.split(key, 8)
    s = 0.02
    return {
        "in_proj_weight": s * jax.random.normal(ks[0], (3 * D, D), jnp.float32),
        "in_proj_bias":   s * jax.random.normal(ks[1], (3 * D,), jnp.float32),
        "out_proj_weight": s * jax.random.normal(ks[2], (D, D), jnp.float32),
        "out_proj_bias":   s * jax.random.normal(ks[3], (D,), jnp.float32),
        "w1": s * jax.random.normal(ks[4], (F, D), jnp.float32),
        "b1": s * jax.random.normal(ks[5], (F,), jnp.float32),
        "w2": s * jax.random.normal(ks[6], (D, F), jnp.float32),
        "b2": s * jax.random.normal(ks[7], (D,), jnp.float32),
        "ln1_w": jnp.ones((D,), jnp.float32), "ln1_b": jnp.zeros((D,), jnp.float32),
        "ln2_w": jnp.ones((D,), jnp.float32), "ln2_b": jnp.zeros((D,), jnp.float32),
    }


def prepare_params(p, nhead, compute_dtype=jnp.bfloat16):
    """Pre-transpose / split / pack / cast PyTorch-layout params for the kernels.

    The 1/sqrt(head_dim) softmax scale is folded into wq/bq here (one-time host
    prep); weights are stored bf16 (documented inference-level deviation from a
    pure-f32 PyTorch reference).
    """
    D = p["out_proj_weight"].shape[0]
    hd = D // nhead
    scale = 1.0 / math.sqrt(hd)
    wq, wk, wv = jnp.split(p["in_proj_weight"], 3, axis=0)
    bq, bk, bv = jnp.split(p["in_proj_bias"], 3, axis=0)
    t = lambda w: jnp.asarray(w.T, dtype=compute_dtype)            # (in, out), bf16
    return {
        "wq_t": jnp.asarray(wq.T * scale, dtype=compute_dtype),
        "wk_t": t(wk), "wv_t": t(wv),
        "bqkv": jnp.stack([bq * scale, bk, bv]).astype(jnp.float32),    # (3, D)
        "wo_t": t(p["out_proj_weight"]),
        "w1_t": t(p["w1"]), "w2_t": t(p["w2"]),
        "b1": jnp.asarray(p["b1"], jnp.float32).reshape(1, -1),         # (1, F)
        "pvec": jnp.stack([p["out_proj_bias"], p["b2"],
                           p["ln1_w"], p["ln1_b"],
                           p["ln2_w"], p["ln2_b"]]).astype(jnp.float32),  # (6, D)
    }


# -------------------- pure-JAX reference (f32) --------------------

def _ln_ref(x, w, b, eps=1e-5):
    m = jnp.mean(x, axis=-1, keepdims=True)
    v = jnp.mean((x - m) ** 2, axis=-1, keepdims=True)
    return (x - m) * jax.lax.rsqrt(v + eps) * w + b


def transformer_block_ref(x, p, *, nhead):
    B, S, D = x.shape
    hd = D // nhead
    wq, wk, wv = jnp.split(p["in_proj_weight"], 3, axis=0)
    bq, bk, bv = jnp.split(p["in_proj_bias"], 3, axis=0)
    q = x @ wq.T + bq
    k = x @ wk.T + bk
    v = x @ wv.T + bv
    q = q.reshape(B, S, nhead, hd).transpose(0, 2, 1, 3)
    k = k.reshape(B, S, nhead, hd).transpose(0, 2, 1, 3)
    v = v.reshape(B, S, nhead, hd).transpose(0, 2, 1, 3)
    s = jnp.einsum('bhqd,bhkd->bhqk', q, k) / math.sqrt(hd)
    a = jax.nn.softmax(s, axis=-1)
    o = jnp.einsum('bhqk,bhkd->bhqd', a, v).transpose(0, 2, 1, 3).reshape(B, S, D)
    attn = o @ p["out_proj_weight"].T + p["out_proj_bias"]
    y = _ln_ref(x + attn, p["ln1_w"], p["ln1_b"])
    h1 = jax.nn.relu(y @ p["w1"].T + p["b1"])
    ff = h1 @ p["w2"].T + p["b2"]
    return _ln_ref(y + ff, p["ln2_w"], p["ln2_b"])


if __name__ == "__main__":
    B, S, D, H, FF = 2, 8, 32, 4, 64   # batch, seq, d_model, nhead, dim_feedforward

    key = jax.random.PRNGKey(0)
    kx, kp = jax.random.split(key)
    x = jax.random.normal(kx, (B, S, D), jnp.float32)

    torch_layout_params = init_params(kp, D, H, FF)
    params = prepare_params(torch_layout_params, nhead=H)

    out = transformer_block(x, params, nhead=H)
    jax.block_until_ready(out)
    assert out.shape == (B, S, D)

    ref = transformer_block_ref(x, torch_layout_params, nhead=H)
    err = float(jnp.max(jnp.abs(out - ref)))
    assert jnp.allclose(out, ref, atol=2e-2, rtol=2e-2), err

    # TODO(synk): dropout is implemented as identity (eval-mode semantics);
    # attention masks / key-padding masks are not supported (matches forward()).
    print("KERNEL_OK")
</pallas_src>

<mosaic_0001>
module attributes {stable_mosaic.version = 11 : i64} {
  func.func @qkv_proj_kernel(%arg0: i32, %arg1: i32, %arg2: memref<1x8x32xf32, #tpu.memory_space<vmem>>, %arg3: memref<32x32xbf16, #tpu.memory_space<vmem>>, %arg4: memref<32x32xbf16, #tpu.memory_space<vmem>>, %arg5: memref<32x32xbf16, #tpu.memory_space<vmem>>, %arg6: memref<3x32xf32, #tpu.memory_space<vmem>>, %arg7: memref<1x4x8x8xbf16, #tpu.memory_space<vmem>>, %arg8: memref<1x4x8x8xbf16, #tpu.memory_space<vmem>>, %arg9: memref<1x4x8x8xbf16, #tpu.memory_space<vmem>>) attributes {dimension_semantics = [#tpu.dimension_semantics<parallel>, #tpu.dimension_semantics<parallel>], iteration_bounds = array<i64: 2, 1>, scalar_prefetch = 0 : i64, scratch_operands = 0 : i64, tpu.core_type = #tpu.core_type<tc>, window_params = [{transform_indices = @transform_0, window_bounds = array<i64: 1, 8, 32>}, {pipeline_mode = #tpu.pipeline_mode<synchronous>, transform_indices = @transform_1, window_bounds = array<i64: 32, 32>}, {pipeline_mode = #tpu.pipeline_mode<synchronous>, transform_indices = @transform_2, window_bounds = array<i64: 32, 32>}, {pipeline_mode = #tpu.pipeline_mode<synchronous>, transform_indices = @transform_3, window_bounds = array<i64: 32, 32>}, {pipeline_mode = #tpu.pipeline_mode<synchronous>, transform_indices = @transform_4, window_bounds = array<i64: 3, 32>}, {transform_indices = @transform_5, window_bounds = array<i64: 1, 4, 8, 8>}, {transform_indices = @transform_6, window_bounds = array<i64: 1, 4, 8, 8>}, {transform_indices = @transform_7, window_bounds = array<i64: 1, 4, 8, 8>}]} {
    %c0 = arith.constant 0 : index
    %c0_0 = arith.constant 0 : index
    %c0_1 = arith.constant 0 : index
    %0 = vector.load %arg2[%c0, %c0_0, %c0_1] : memref<1x8x32xf32, #tpu.memory_space<vmem>>, vector<1x8x32xf32>
    %1 = vector.shape_cast %0 : vector<1x8x32xf32> to vector<8x32xf32>
    %2 = arith.truncf %1 : vector<8x32xf32> to vector<8x32xbf16>
    %c0_2 = arith.constant 0 : index
    %c0_3 = arith.constant 0 : index
    %3 = vector.load %arg6[%c0_2, %c0_3] : memref<3x32xf32, #tpu.memory_space<vmem>>, vector<1x32xf32>
    %c1 = arith.constant 1 : index
    %c0_4 = arith.constant 0 : index
    %4 = vector.load %arg6[%c1, %c0_4] : memref<3x32xf32, #tpu.memory_space<vmem>>, vector<1x32xf32>
    %c2 = arith.constant 2 : index
    %c0_5 = arith.constant 0 : index
    %5 = vector.load %arg6[%c2, %c0_5] : memref<3x32xf32, #tpu.memory_space<vmem>>, vector<1x32xf32>
    %c0_6 = arith.constant 0 : index
    %c0_7 = arith.constant 0 : index
    %6 = vector.load %arg3[%c0_6, %c0_7] : memref<32x32xbf16, #tpu.memory_space<vmem>>, vector<32x32xbf16>
    %cst = arith.constant dense<0.000000e+00> : vector<8x32xf32>
    %7 = tpu.matmul %2, %6, %cst {dimension_numbers = #tpu.dot_dimension_numbers<[1], [0], [0], [1], [0, 0, 1, 1], [], []>} : vector<8x32xbf16>, vector<32x32xbf16>, vector<8x32xf32> -> vector<8x32xf32>
    %8 = vector.broadcast %3 : vector<1x32xf32> to vector<8x32xf32>
    %9 = arith.addf %7, %8 : vector<8x32xf32>
    %c0_8 = arith.constant 0 : index
    %c0_9 = arith.constant 0 : index
    %10 = vector.load %arg4[%c0_8, %c0_9] : memref<32x32xbf16, #tpu.memory_space<vmem>>, vector<32x32xbf16>
    %cst_10 = arith.constant dense<0.000000e+00> : vector<8x32xf32>
    %11 = tpu.matmul %2, %10, %cst_10 {dimension_numbers = #tpu.dot_dimension_numbers<[1], [0], [0], [1], [0, 0, 1, 1], [], []>} : vector<8x32xbf16>, vector<32x32xbf16>, vector<8x32xf32> -> vector<8x32xf32>
    %12 = vector.broadcast %4 : vector<1x32xf32> to vector<8x32xf32>
    %13 = arith.addf %11, %12 : vector<8x32xf32>
    %c0_11 = arith.constant 0 : index
    %c0_12 = arith.constant 0 : index
    %14 = vector.load %arg5[%c0_11, %c0_12] : memref<32x32xbf16, #tpu.memory_space<vmem>>, vector<32x32xbf16>
    %cst_13 = arith.constant dense<0.000000e+00> : vector<8x32xf32>
    %15 = tpu.matmul %2, %14, %cst_13 {dimension_numbers = #tpu.dot_dimension_numbers<[1], [0], [0], [1], [0, 0, 1, 1], [], []>} : vector<8x32xbf16>, vector<32x32xbf16>, vector<8x32xf32> -> vector<8x32xf32>
    %16 = vector.broadcast %5 : vector<1x32xf32> to vector<8x32xf32>
    %17 = arith.addf %15, %16 : vector<8x32xf32>
    %18 = vector.shape_cast %9 : vector<8x32xf32> to vector<8x4x8xf32>
    %19 = tpu.transpose %18, [1, 0, 2] : vector<8x4x8xf32> -> vector<4x8x8xf32>
    %20 = arith.truncf %19 : vector<4x8x8xf32> to vector<4x8x8xbf16>
    %c0_14 = arith.constant 0 : index
    %c0_15 = arith.constant 0 : index
    %c0_16 = arith.constant 0 : index
    %c0_17 = arith.constant 0 : index
    %21 = vector.load %arg7[%c0_14, %c0_15, %c0_16, %c0_17] : memref<1x4x8x8xbf16, #tpu.memory_space<vmem>>, vector<1x4x8x8xbf16>
    %22 = vector.shape_cast %21 : vector<1x4x8x8xbf16> to vector<4x8x8xbf16>
    %23 = vector.shape_cast %20 : vector<4x8x8xbf16> to vector<1x4x8x8xbf16>
    tpu.vector_store %arg7[%c0_14, %c0_15, %c0_16, %c0_17], %23 {strides = array<i32>} : memref<1x4x8x8xbf16, #tpu.memory_space<vmem>>, vector<1x4x8x8xbf16>,
    %24 = vector.shape_cast %13 : vector<8x32xf32> to vector<8x4x8xf32>
    %25 = tpu.transpose %24, [1, 0, 2] : vector<8x4x8xf32> -> vector<4x8x8xf32>
    %26 = arith.truncf %25 : vector<4x8x8xf32> to vector<4x8x8xbf16>
    %c0_18 = arith.constant 0 : index
    %c0_19 = arith.constant 0 : index
    %c0_20 = arith.constant 0 : index
    %c0_21 = arith.constant 0 : index
    %27 = vector.load %arg8[%c0_18, %c0_19, %c0_20, %c0_21] : memref<1x4x8x8xbf16, #tpu.memory_space<vmem>>, vector<1x4x8x8xbf16>
    %28 = vector.shape_cast %27 : vector<1x4x8x8xbf16> to vector<4x8x8xbf16>
    %29 = vector.shape_cast %26 : vector<4x8x8xbf16> to vector<1x4x8x8xbf16>
    tpu.vector_store %arg8[%c0_18, %c0_19, %c0_20, %c0_21], %29 {strides = array<i32>} : memref<1x4x8x8xbf16, #tpu.memory_space<vmem>>, vector<1x4x8x8xbf16>,
    %30 = vector.shape_cast %17 : vector<8x32xf32> to vector<8x4x8xf32>
    %31 = tpu.transpose %30, [1, 0, 2] : vector<8x4x8xf32> -> vector<4x8x8xf32>
    %32 = arith.truncf %31 : vector<4x8x8xf32> to vector<4x8x8xbf16>
    %c0_22 = arith.constant 0 : index
    %c0_23 = arith.constant 0 : index
    %c0_24 = arith.constant 0 : index
    %c0_25 = arith.constant 0 : index
    %33 = vector.load %arg9[%c0_22, %c0_23, %c0_24, %c0_25] : memref<1x4x8x8xbf16, #tpu.memory_space<vmem>>, vector<1x4x8x8xbf16>
    %34 = vector.shape_cast %33 : vector<1x4x8x8xbf16> to vector<4x8x8xbf16>
    %35 = vector.shape_cast %32 : vector<4x8x8xbf16> to vector<1x4x8x8xbf16>
    tpu.vector_store %arg9[%c0_22, %c0_23, %c0_24, %c0_25], %35 {strides = array<i32>} : memref<1x4x8x8xbf16, #tpu.memory_space<vmem>>, vector<1x4x8x8xbf16>,
    return
  }
  func.func @transform_0(%arg0: i32, %arg1: i32) -> (i32, i32, i32) {
    %c0_i32 = arith.constant 0 : i32
    %c0_i32_0 = arith.constant 0 : i32
    return %arg0, %arg1, %c0_i32 : i32, i32, i32
  }
  func.func @transform_1(%arg0: i32, %arg1: i32) -> (i32, i32) {
    %c0_i32 = arith.constant 0 : i32
    %c0_i32_0 = arith.constant 0 : i32
    %c0_i32_1 = arith.constant 0 : i32
    return %c0_i32, %c0_i32_0 : i32, i32
  }
  func.func @transform_2(%arg0: i32, %arg1: i32) -> (i32, i32) {
    %c0_i32 = arith.constant 0 : i32
    %c0_i32_0 = arith.constant 0 : i32
    %c0_i32_1 = arith.constant 0 : i32
    return %c0_i32, %c0_i32_0 : i32, i32
  }
  func.func @transform_3(%arg0: i32, %arg1: i32) -> (i32, i32) {
    %c0_i32 = arith.constant 0 : i32
    %c0_i32_0 = arith.constant 0 : i32
    %c0_i32_1 = arith.constant 0 : i32
    return %c0_i32, %c0_i32_0 : i32, i32
  }
  func.func @transform_4(%arg0: i32, %arg1: i32) -> (i32, i32) {
    %c0_i32 = arith.constant 0 : i32
    %c0_i32_0 = arith.constant 0 : i32
    %c0_i32_1 = arith.constant 0 : i32
    return %c0_i32, %c0_i32_0 : i32, i32
  }
  func.func @transform_5(%arg0: i32, %arg1: i32) -> (i32, i32, i32, i32) {
    %c0_i32 = arith.constant 0 : i32
    %c0_i32_0 = arith.constant 0 : i32
    %c0_i32_1 = arith.constant 0 : i32
    return %arg0, %c0_i32, %arg1, %c0_i32_0 : i32, i32, i32, i32
  }
  func.func @transform_6(%arg0: i32, %arg1: i32) -> (i32, i32, i32, i32) {
    %c0_i32 = arith.constant 0 : i32
    %c0_i32_0 = arith.constant 0 : i32
    %c0_i32_1 = arith.constant 0 : i32
    return %arg0, %c0_i32, %arg1, %c0_i32_0 : i32, i32, i32, i32
  }
  func.func @transform_7(%arg0: i32, %arg1: i32) -> (i32, i32, i32, i32) {
    %c0_i32 = arith.constant 0 : i32
    %c0_i32_0 = arith.constant 0 : i32
    %c0_i32_1 = arith.constant 0 : i32
    return %arg0, %c0_i32, %arg1, %c0_i32_0 : i32, i32, i32, i32
  }
}

module attributes {stable_mosaic.version = 11 : i64} {
  func.func @qkv_proj_kernel(%arg0: i32, %arg1: i32, %arg2: memref<1x8x32xf32, #tpu.memory_space<vmem>>, %arg3: memref<32x32xbf16, #tpu.memory_space<vmem>>, %arg4: memref<32x32xbf16, #tpu.memory_space<vmem>>, %arg5: memref<32x32xbf16, #tpu.memory_space<vmem>>, %arg6: memref<3x32xf32, #tpu.memory_space<vmem>>, %arg7: memref<1x4x8x8xbf16, #tpu.memory_space<vmem>>, %arg8: memref<1x4x8x8xbf16, #tpu.memory_space<vmem>>, %arg9: memref<1x4x8x8xbf16, #tpu.memory_space<vmem>>) attributes {dimension_semantics = [#tpu.dimension_semantics<parallel>, #tpu.dimension_semantics<parallel>], iteration_bounds = array<i64: 2, 1>, scalar_prefetch = 0 : i64, scratch_operands = 0 : i64, tpu.core_type = #tpu.core_type<tc>, window_params = [{transform_indices = @transform_0, window_bounds = array<i64: 1, 8, 32>}, {pipeline_mode = #tpu.pipeline_mode<synchronous>, transform_indices = @transform_1, window_bounds = array<i64: 32, 32>}, {pipeline_mode = #tpu.pipeline_mode<synchronous>, transform_indices = @transform_2, window_bounds = array<i64: 32, 32>}, {pipeline_mode = #tpu.pipeline_mode<synchronous>, transform_indices = @transform_3, window_bounds = array<i64: 32, 32>}, {pipeline_mode = #tpu.pipeline_mode<synchronous>, transform_indices = @transform_4, window_bounds = array<i64: 3, 32>}, {transform_indices = @transform_5, window_bounds = array<i64: 1, 4, 8, 8>}, {transform_indices = @transform_6, window_bounds = array<i64: 1, 4, 8, 8>}, {transform_indices = @transform_7, window_bounds = array<i64: 1, 4, 8, 8>}]} {
    %c0 = arith.constant 0 : index
    %c0_0 = arith.constant 0 : index
    %c0_1 = arith.constant 0 : index
    %0 = vector.load %arg2[%c0, %c0_0, %c0_1] : memref<1x8x32xf32, #tpu.memory_space<vmem>>, vector<1x8x32xf32>
    %1 = vector.shape_cast %0 : vector<1x8x32xf32> to vector<8x32xf32>
    %2 = arith.truncf %1 : vector<8x32xf32> to vector<8x32xbf16>
    %c0_2 = arith.constant 0 : index
    %c0_3 = arith.constant 0 : index
    %3 = vector.load %arg6[%c0_2, %c0_3] : memref<3x32xf32, #tpu.memory_space<vmem>>, vector<1x32xf32>
    %c1 = arith.constant 1 : index
    %c0_4 = arith.constant 0 : index
    %4 = vector.load %arg6[%c1, %c0_4] : memref<3x32xf32, #tpu.memory_space<vmem>>, vector<1x32xf32>
    %c2 = arith.constant 2 : index
    %c0_5 = arith.constant 0 : index
    %5 = vector.load %arg6[%c2, %c0_5] : memref<3x32xf32, #tpu.memory_space<vmem>>, vector<1x32xf32>
    %c0_6 = arith.constant 0 : index
    %c0_7 = arith.constant 0 : index
    %6 = vector.load %arg3[%c0_6, %c0_7] : memref<32x32xbf16, #tpu.memory_space<vmem>>, vector<32x32xbf16>
    %cst = arith.constant dense<0.000000e+00> : vector<8x32xf32>
    %7 = tpu.matmul %2, %6, %cst {dimension_numbers = #tpu.dot_dimension_numbers<[1], [0], [0], [1], [0, 0, 1, 1], [], []>} : vector<8x32xbf16>, vector<32x32xbf16>, vector<8x32xf32> -> vector<8x32xf32>
    %8 = vector.broadcast %3 : vector<1x32xf32> to vector<8x32xf32>
    %9 = arith.addf %7, %8 : vector<8x32xf32>
    %c0_8 = arith.constant 0 : index
    %c0_9 = arith.constant 0 : index
    %10 = vector.load %arg4[%c0_8, %c0_9] : memref<32x32xbf16, #tpu.memory_space<vmem>>, vector<32x32xbf16>
    %cst_10 = arith.constant dense<0.000000e+00> : vector<8x32xf32>
    %11 = tpu.matmul %2, %10, %cst_10 {dimension_numbers = #tpu.dot_dimension_numbers<[1], [0], [0], [1], [0, 0, 1, 1], [], []>} : vector<8x32xbf16>, vector<32x32xbf16>, vector<8x32xf32> -> vector<8x32xf32>
    %12 = vector.broadcast %4 : vector<1x32xf32> to vector<8x32xf32>
    %13 = arith.addf %11, %12 : vector<8x32xf32>
    %c0_11 = arith.constant 0 : index
    %c0_12 = arith.constant 0 : index
    %14 = vector.load %arg5[%c0_11, %c0_12] : memref<32x32xbf16, #tpu.memory_space<vmem>>, vector<32x32xbf16>
    %cst_13 = arith.constant dense<0.000000e+00> : vector<8x32xf32>
    %15 = tpu.matmul %2, %14, %cst_13 {dimension_numbers = #tpu.dot_dimension_numbers<[1], [0], [0], [1], [0, 0, 1, 1], [], []>} : vector<8x32xbf16>, vector<32x32xbf16>, vector<8x32xf32> -> vector<8x32xf32>
    %16 = vector.broadcast %5 : vector<1x32xf32> to vector<8x32xf32>
    %17 = arith.addf %15, %16 : vector<8x32xf32>
    %18 = vector.shape_cast %9 : vector<8x32xf32> to vector<8x4x8xf32>
    %19 = tpu.transpose %18, [1, 0, 2] : vector<8x4x8xf32> -> vector<4x8x8xf32>
    %20 = arith.truncf %19 : vector<4x8x8xf32> to vector<4x8x8xbf16>
    %c0_14 = arith.constant 0 : index
    %c0_15 = arith.constant 0 : index
    %c0_16 = arith.constant 0 : index
    %c0_17 = arith.constant 0 : index
    %21 = vector.load %arg7[%c0_14, %c0_15, %c0_16, %c0_17] : memref<1x4x8x8xbf16, #tpu.memory_space<vmem>>, vector<1x4x8x8xbf16>
    %22 = vector.shape_cast %21 : vector<1x4x8x8xbf16> to vector<4x8x8xbf16>
    %23 = vector.shape_cast %20 : vector<4x8x8xbf16> to vector<1x4x8x8xbf16>
    tpu.vector_store %arg7[%c0_14, %c0_15, %c0_16, %c0_17], %23 {strides = array<i32>} : memref<1x4x8x8xbf16, #tpu.memory_space<vmem>>, vector<1x4x8x8xbf16>,
    %24 = vector.shape_cast %13 : vector<8x32xf32> to vector<8x4x8xf32>
    %25 = tpu.transpose %24, [1, 0, 2] : vector<8x4x8xf32> -> vector<4x8x8xf32>
    %26 = arith.truncf %25 : vector<4x8x8xf32> to vector<4x8x8xbf16>
    %c0_18 = arith.constant 0 : index
    %c0_19 = arith.constant 0 : index
    %c0_20 = arith.constant 0 : index
    %c0_21 = arith.constant 0 : index
    %27 = vector.load %arg8[%c0_18, %c0_19, %c0_20, %c0_21] : memref<1x4x8x8xbf16, #tpu.memory_space<vmem>>, vector<1x4x8x8xbf16>
    %28 = vector.shape_cast %27 : vector<1x4x8x8xbf16> to vector<4x8x8xbf16>
    %29 = vector.shape_cast %26 : vector<4x8x8xbf16> to vector<1x4x8x8xbf16>
    tpu.vector_store %arg8[%c0_18, %c0_19, %c0_20, %c0_21], %29 {strides = array<i32>} : memref<1x4x8x8xbf16, #tpu.memory_space<vmem>>, vector<1x4x8x8xbf16>,
    %30 = vector.shape_cast %17 : vector<8x32xf32> to vector<8x4x8xf32>
    %31 = tpu.transpose %30, [1, 0, 2] : vector<8x4x8xf32> -> vector<4x8x8xf32>
    %32 = arith.truncf %31 : vector<4x8x8xf32> to vector<4x8x8xbf16>
    %c0_22 = arith.constant 0 : index
    %c0_23 = arith.constant 0 : index
    %c0_24 = arith.constant 0 : index
    %c0_25 = arith.constant 0 : index
    %33 = vector.load %arg9[%c0_22, %c0_23, %c0_24, %c0_25] : memref<1x4x8x8xbf16, #tpu.memory_space<vmem>>, vector<1x4x8x8xbf16>
    %34 = vector.shape_cast %33 : vector<1x4x8x8xbf16> to vector<4x8x8xbf16>
    %35 = vector.shape_cast %32 : vector<4x8x8xbf16> to vector<1x4x8x8xbf16>
    tpu.vector_store %arg9[%c0_22, %c0_23, %c0_24, %c0_25], %35 {strides = array<i32>} : memref<1x4x8x8xbf16, #tpu.memory_space<vmem>>, vector<1x4x8x8xbf16>,
    return
  }
  func.func @transform_0(%arg0: i32, %arg1: i32) -> (i32, i32, i32) {
    %c0_i32 = arith.constant 0 : i32
    %c0_i32_0 = arith.constant 0 : i32
    return %arg0, %arg1, %c0_i32 : i32, i32, i32
  }
  func.func @transform_1(%arg0: i32, %arg1: i32) -> (i32, i32) {
    %c0_i32 = arith.constant 0 : i32
    %c0_i32_0 = arith.constant 0 : i32
    %c0_i32_1 = arith.constant 0 : i32
    return %c0_i32, %c0_i32_0 : i32, i32
  }
  func.func @transform_2(%arg0: i32, %arg1: i32) -> (i32, i32) {
    %c0_i32 = arith.constant 0 : i32
    %c0_i32_0 = arith.constant 0 : i32
    %c0_i32_1 = arith.constant 0 : i32
    return %c0_i32, %c0_i32_0 : i32, i32
  }
  func.func @transform_3(%arg0: i32, %arg1: i32) -> (i32, i32) {
    %c0_i32 = arith.constant 0 : i32
    %c0_i32_0 = arith.constant 0 : i32
    %c0_i32_1 = arith.constant 0 : i32
    return %c0_i32, %c0_i32_0 : i32, i32
  }
  func.func @transform_4(%arg0: i32, %arg1: i32) -> (i32, i32) {
    %c0_i32 = arith.constant 0 : i32
    %c0_i32_0 = arith.constant 0 : i32
    %c0_i32_1 = arith.constant 0 : i32
    return %c0_i32, %c0_i32_0 : i32, i32
  }
  func.func @transform_5(%arg0: i32, %arg1: i32) -> (i32, i32, i32, i32) {
    %c0_i32 = arith.constant 0 : i32
    %c0_i32_0 = arith.constant 0 : i32
    %c0_i32_1 = arith.constant 0 : i32
    return %arg0, %c0_i32, %arg1, %c0_i32_0 : i32, i32, i32, i32
  }
  func.func @transform_6(%arg0: i32, %arg1: i32) -> (i32, i32, i32, i32) {
    %c0_i32 = arith.constant 0 : i32
    %c0_i32_0 = arith.constant 0 : i32
    %c0_i32_1 = arith.constant 0 : i32
    return %arg0, %c0_i32, %arg1, %c0_i32_0 : i32, i32, i32, i32
  }
  func.func @transform_7(%arg0: i32, %arg1: i32) -> (i32, i32, i32, i32) {
    %c0_i32 = arith.constant 0 : i32
    %c0_i32_0 = arith.constant 0 : i32
    %c0_i32_1 = arith.constant 0 : i32
    return %arg0, %c0_i32, %arg1, %c0_i32_0 : i32, i32, i32, i32
  }
}

</mosaic_0001>

<bundles_post_ra>
// kernel: tpu_custom_call.1
= control target key start
LH: loop header
LB: loop body
LE: loop exit
PB: predicated region body
PF: predicated region fallthrough
CT: control target
= control target key end

     0   :  { %s2258_s0 = inlined_call_operand.hbm [shape: f32[2,8,32], index: 0, kind: input, shape index: {}]   ;;  %s2259_s1 = inlined_call_operand.hbm [shape: bf16[32,32], index: 1, kind: input, shape index: {}]   ;;  %s2260_s2 = inlined_call_operand.hbm [shape: bf16[32,32], index: 2, kind: input, shape index: {}]   ;;  %s2261_s3 = inlined_call_operand.hbm [shape: bf16[32,32], index: 3, kind: input, shape index: {}]   ;;  %s2262_s4 = inlined_call_operand.vmem [shape: f32[3,32], index: 4, kind: input, shape index: {}]   ;;  %s2263_s5 = inlined_call_operand.hbm [shape: bf16[2,4,8,8], index: 5, kind: output, shape index: {0}]   ;;  %s2264_s6 = inlined_call_operand.hbm [shape: bf16[2,4,8,8], index: 6, kind: output, shape index: {1}]   ;;  %s2265_s7 = inlined_call_operand.hbm [shape: bf16[2,4,8,8], index: 7, kind: output, shape index: {2}]  }
   0x1   :  { %2273 = sst [smem:[#allocation21_spill]] %s2265_s7 }
   0x2   :  { %13 = vsyncpa [#allocation3], 0 }
   0x3   :  { %15 = vsyncpa [#allocation3 + $0x1], 0 }
   0x4   :  { %16 = vsyncpa [#allocation6], 0 }
   0x5   :  { %17 = vsyncpa [#allocation9], 0 }
   0x6   :  { %18 = vsyncpa [#allocation4], 0 }
   0x7   :  { %20 = vsyncpa [#allocation4 + $0x1], 0 }
   0x8   :  { %21 = vsyncpa [#allocation12], 0 }
   0x9   :  { %23 = vsyncpa [#allocation12 + $0x1], 0  ;;  %s1793_s24 = smov 0   ;;  %s1795_s25 = smov 0  }
   0xa   :  { %s1797_s26 = smov 0   ;;  %s1799_s27 = smov 0  }
   0xb   :  { %s1801_s28 = smov 0   ;;  %s1803_s29 = smov 0  }
   0xc LB: > { %2274 = sst [smem:[#allocation19_spill]] %s1713_s24  ;;  %s1824_s30 = sadd.s32 4294967295, %s1733_s29   ;;  %s1733_s29 = sphi %s1803_s29, %s29_s29   ;;  %s1729_s28 = sphi %s1801_s28, %s2300_s28   ;;  %s1725_s27 = sphi %s1799_s27, %s2299_s27   ;;  %s1721_s26 = sphi %s1797_s26, %s2298_s26   ;;  %s1717_s25 = sphi %s1795_s25, %s2297_s25   ;;  %s1713_s24 = sphi %s1793_s24, %s2296_s24  }
   0xd   : > { %s2267_s8 = sadd.s32 4294967294, %s1733_s29   ;;  %p63_p0 = scmp.ne.s32.totalorder %s1717_s25, %s1713_s24 }
   0xe   : > { %p2266_p1 = scmp.eq.s32.totalorder %s1824_s30, 0  ;;  %p179_p3 = scmp.eq.s32.totalorder %s2267_s8, 1 }
   0xf   : > { %p1269_p5 = scmp.ge.s32.totalorder %s1733_s29, 1  ;;  %p242_p7 = scmp.lt.s32.totalorder %s1733_s29, 3 }
  0x10   : > { %p1835_p4 = por %p2266_p1, %p63_p0  ;;  %p1840_p6 = por %p179_p3, %p63_p0 }
  0x11   : > { %p1845_p8 = pnand %p1269_p5, %p242_p7  ;;  %s1735_s12 = smov [#allocation5]  }
  0x12   : > { %s2275_s9 = scalar_select %p1835_p4, 1, 0 }
  0x13   : > { %s2276_s10 = scalar_select %p1840_p6, 1, 0 }
  0x14   : > { %s2278_s11 = scalar_select %p1845_p8, 1, 0 }
  0x15   : > { %2277 = sst [smem:[#allocation20_spill]] %s2276_s10  ;;  %s254_s13 = sshll.u32 %s1735_s12, 4  ;;  %s1849_s13 = int_to_ptr.vmem [resolvable:$true] %s254_s13 }
  0x16   : > { %p1369_p9 = pneg %p1845_p8  ;;  %s1736_s15 = smov [#allocation7]  }
  0x17   : > { %s267_s16 = sshll.u32 %s1736_s15, 4  ;;  %s1737_s17 = smov [#allocation8]   ;;  %s1860_s16 = int_to_ptr.vmem [resolvable:$true] %s267_s16 }
  0x18   : > { %p1856_p11 = pnand %p1369_p9, %p2266_p1  ;;  %s1862_s18 = sshll.u32 %s1737_s17, 4  ;;  %s281_s18 = int_to_ptr.vmem [resolvable:$true] %s1862_s18 }
  0x19   : > { %s1469_s21 = scalar_lea.hbm %s2259_s1, 256 }
  0x1a   : > { %p1470_p12 = scmp.ne.s32.totalorder %s2259_s1, %s1469_s21  ;;  %p1872_p13 = pneg %p1856_p11 }
  0x1b   : > { %p1476_p5 = scmp.lt.u32.totalorder %s1469_s21, %s2259_s1 }
  0x1c   : > { %p1472_p0 = pnand %p1872_p13, %p1470_p12 }
  0x1e   : > { %p1473_p3 = pneg %p1472_p0 }
  0x20   : > { %p1478_p7 = pnand %p1476_p5, %p1473_p3 }
  0x22   : > { %1481 = shalt.err (!%p1478_p7)
}
  0x23   : > { %s1482_s19 = scalar_lea.vmem %s1849_s13, 256  ;;  %p1490_p2 = scmp.lt.s32.totalorder %s1849_s13, %s1849_s13 }
  0x24   : > { %p1483_p9 = scmp.ne.s32.totalorder %s1849_s13, %s1482_s19  ;;  %p1491_p6 = scmp.lt.s32.totalorder %s1482_s19, %s1482_s19 }
  0x26   : > { %p1485_p10 = pnand %p1483_p9, %p1872_p13  ;;  %p1492_p12 = por %p1491_p6, %p1490_p2 }
  0x28   : > { %p1486_p1 = pneg %p1485_p10 }
  0x2a   : > { %p1493_p0 = pnand %p1492_p12, %p1486_p1 }
  0x2c   : > { %1496 = shalt.err (!%p1493_p0)
}
  0x2d   : > { %s1738_s20 = smov 64   ;;  %s1739_s21 = smov 4  }
  0x2e   : > { %1372 = dma.hbm_to_vmem [thread:$0]  (!%p1856_p11), %s2259_s1, 256, %s1849_s13, [#allocation6], %s1738_s20, %s1738_s20, %s1739_s21  }
  0x2f   : > { %s1497_s19 = scalar_lea.hbm %s2260_s2, 256 }
  0x30   : > { %p1498_p1 = scmp.ne.s32.totalorder %s2260_s2, %s1497_s19  ;;  %p1504_p10 = scmp.lt.u32.totalorder %s1497_s19, %s2260_s2 }
  0x32   : > { %p1500_p2 = pnand %p1498_p1, %p1872_p13 }
  0x34   : > { %p1501_p6 = pneg %p1500_p2 }
  0x36   : > { %p1506_p3 = pnand %p1504_p10, %p1501_p6 }
  0x38   : > { %1509 = shalt.err (!%p1506_p3)
}
  0x39   : > { %s1510_s13 = scalar_lea.vmem %s1860_s16, 256  ;;  %p1518_p12 = scmp.lt.s32.totalorder %s1860_s16, %s1860_s16 }
  0x3a   : > { %p1511_p5 = scmp.ne.s32.totalorder %s1860_s16, %s1510_s13  ;;  %p1519_p0 = scmp.lt.s32.totalorder %s1510_s13, %s1510_s13 }
  0x3c   : > { %p1513_p7 = pnand %p1511_p5, %p1872_p13  ;;  %p1520_p1 = por %p1519_p0, %p1518_p12 }
  0x3e   : > { %p1514_p9 = pneg %p1513_p7 }
  0x40   : > { %p1521_p2 = pnand %p1520_p1, %p1514_p9 }
  0x42   : > { %1524 = shalt.err (!%p1521_p2)
}
  0x43   : > { %1375 = dma.hbm_to_vmem [thread:$0]  (!%p1856_p11), %s2260_s2, 256, %s1860_s16, [#allocation6], %s1738_s20, %s1738_s20, %s1739_s21  }
  0x44   : > { %s1525_s22 = scalar_lea.hbm %s2261_s3, 256 }
  0x45   : > { %p1526_p6 = scmp.ne.s32.totalorder %s2261_s3, %s1525_s22  ;;  %p1532_p5 = scmp.lt.u32.totalorder %s1525_s22, %s2261_s3 }
  0x47   : > { %p1528_p10 = pnand %p1526_p6, %p1872_p13 }
  0x49   : > { %p1529_p3 = pneg %p1528_p10 }
  0x4b   : > { %p1534_p7 = pnand %p1532_p5, %p1529_p3 }
  0x4d   : > { %1537 = shalt.err (!%p1534_p7)
}
  0x4e   : > { %s1538_s13 = scalar_lea.vmem %s281_s18, 256  ;;  %p1546_p1 = scmp.lt.s32.totalorder %s281_s18, %s281_s18 }
  0x4f   : > { %p1539_p9 = scmp.ne.s32.totalorder %s281_s18, %s1538_s13  ;;  %p1547_p2 = scmp.lt.s32.totalorder %s1538_s13, %s1538_s13 }
  0x51   : > { %p1541_p12 = pnand %p1539_p9, %p1872_p13  ;;  %p1548_p4 = por %p1547_p2, %p1546_p1 }
  0x53   : > { %p1542_p0 = pneg %p1541_p12 }
  0x55   : > { %p1549_p8 = pnand %p1548_p4, %p1542_p0 }
  0x57   : > { %1552 = shalt.err (!%p1549_p8)
}
  0x58   : > { %1378 = dma.hbm_to_vmem [thread:$0]  (!%p1856_p11), %s2261_s3, 256, %s281_s18, [#allocation9], %s1738_s20, %s1738_s20, %s1739_s21  }
  0x59   : > { %s50_s12 = sadd.s32 1, %s1721_s26  ;;  %s41_s14 = sadd.s32 1, %s1729_s28 }
  0x5a   : > { %p57_p4 = scmp.ne.s32.totalorder %s1721_s26, %s1717_s25  ;;  %p43_p8 = scmp.ge.s32.totalorder %s41_s14, 2 }
  0x5b   : > { %p58_p13 = scmp.eq.s32.totalorder %s1733_s29, 0  ;;  %p2281_p6 = scmp.eq.s32.totalorder %s1824_s30, 1 }
  0x5c   : > { %p1396_p3 = scmp.lt.s32.totalorder %s1733_s29, 2  ;;  %s2302_s14 = smov (%p43_p8, %s41_s14), 0 }
  0x5d   : > { %p1951_p10 = por %p2281_p6, %p57_p4  ;;  %p59_p5 = por %p58_p13, %p57_p4 }
  0x5e   : > { %s297_s8 = sand.u32 1, %s1721_s26   ;;  %s45_s10 = ssub.s32 %s1729_s28, %s2302_s14 }
  0x5f   : > { %p48_p7 = scmp.eq.s32.totalorder %s45_s10, 0  ;;  %s1274_s18 = sshll.u32 %s297_s8, 3 }
  0x60   : > { %s1275_s20 = sshll.u32 %s1729_s28, 7  ;;  %s301_s17 = scalar_lea.vmem [#allocation2], %s1274_s18 }
  0x61   : > { %s1963_s21 = scalar_select %p48_p7, %s1721_s26, %s50_s12  }
  0x62   : > { %s1968_s15 = scalar_lea.hbm %s2258_s0, %s1275_s20  ;;  %s309_s19 = sshll.u32 %s301_s17, 4  ;;  %s1970_s19 = int_to_ptr.vmem [resolvable:$true] %s309_s19 }
  0x63   : > { %p1974_p11 = pnand %p1396_p3, %p59_p5  ;;  %s298_s16 = scalar_lea.sflag [#allocation3], %s297_s8 }
  0x64   : > { %s1553_s7 = scalar_lea.hbm %s1968_s15, 128  ;;  %s1558_s18 = scalar_lea.hbm %s2258_s0, 256 }
  0x65   : > { %p1554_p9 = scmp.ne.s32.totalorder %s1968_s15, %s1553_s7  ;;  %p1555_p12 = pneg %p1974_p11 }
  0x66   : > { %p1559_p2 = scmp.lt.u32.totalorder %s1968_s15, %s2258_s0  ;;  %p1560_p4 = scmp.lt.u32.totalorder %s1558_s18, %s1553_s7 }
  0x67   : > { %p1556_p0 = pnand %p1555_p12, %p1554_p9  ;;  %p1562_p13 = scmp.lt.u32.totalorder %s1553_s7, %s1968_s15 }
  0x68   : > { %p1561_p8 = por %p1560_p4, %p1559_p2 }
  0x69   : > { %p1557_p1 = pneg %p1556_p0 }
  0x6a   : > { %p1563_p6 = por %p1562_p13, %p1561_p8 }
  0x6c   : > { %p1564_p3 = pnand %p1563_p6, %p1557_p1 }
  0x6e   : > { %1567 = shalt.err (!%p1564_p3)
}
  0x6f   : > { %s1568_s8 = scalar_lea.vmem %s1970_s19, 128  ;;  %s1740_s23 = smov [#allocation2]  }
  0x70   : > { %p1569_p5 = scmp.ne.s32.totalorder %s1970_s19, %s1568_s8  ;;  %s1573_s17 = sshll.u32 %s1740_s23, 4  ;;  %s1574_s17 = int_to_ptr.vmem [resolvable:$false] %s1573_s17 }
  0x71   : > { %s1575_s12 = scalar_lea.vmem %s1574_s17, 256  ;;  %p1576_p0 = scmp.lt.s32.totalorder %s1970_s19, %s1574_s17 }
  0x72   : > { %p1571_p7 = pnand %p1569_p5, %p1555_p12  ;;  %p1577_p2 = scmp.lt.s32.totalorder %s1575_s12, %s1568_s8 }
  0x74   : > { %p1572_p9 = pneg %p1571_p7  ;;  %p1578_p4 = por %p1577_p2, %p1576_p0 }
  0x76   : > { %p1579_p8 = pnand %p1578_p4, %p1572_p9 }
  0x78   : > { %1582 = shalt.err (!%p1579_p8)
}
  0x79   : > { %1382 = dma.hbm_to_vmem [thread:$0]  (!%p1974_p11), %s1968_s15, 128, %s1970_s19, %s298_s16  }
  0x7a   : > { %p2284_p1 = scmp.ne.s32.totalorder %s2278_s11, 0 }
  0x7b   : > { %s2006_s7 = sand.u32 (!%p2284_p1), 1, %s1717_s25   ;;  %p2285_p12 = scmp.ne.s32.totalorder (!%p2284_p1), %s2275_s9, 0 }
  0x7c   : > { %318 = sbr.rel (%p2284_p1) target bundleno = 570 (0x23a), region = 40  ;;  %s1277_s10 = sshll.u32 (!%p2284_p1), %s2006_s7, 3 }
  0x7d   : > { %s321_s18 = scalar_lea.sflag (!%p2284_p1), [#allocation3], %s2006_s7  ;;  %s324_s20 = scalar_lea.vmem (!%p2284_p1), [#allocation2], %s1277_s10 }
  0x83   : > { %1692 = dma.done.wait (%p2285_p12), %s321_s18, 128  }
  0x84   : > { %1694 = vsyncadd (%p2285_p12), %s321_s18, 4294967168  ;;  %p2286_p13 = scmp.eq.s32.totalorder %s1824_s30, 0 }
  0x86   : > { %1696 = dma.done.wait (%p2286_p13), [#allocation6], 512   ;;  %p2287_p11 = pmov %p2286_p13 }
  0x88   : > { %1698 = vsyncadd (%p2287_p11), [#allocation6], 4294966784  ;;  %p2288_p6 = pmov %p2287_p11 }
  0x8a   : > { %1700 = dma.done.wait (%p2288_p6), [#allocation9], 256   ;;  %p2289_p3 = pmov %p2288_p6 }
  0x8b   : > { %v1741_v0 = vmov 0.0   ;;  %vm1742_vm0 = vmmov 0   ;;  %v1463_v1 = vld [vmem:[#allocation7] sm:$0xff]   ;;  %v1464_v2 = vld [vmem:[#allocation5] sm:$0xff]   ;;  %v1465_v3 = vld [vmem:[#allocation7 + $0x8] sm:$0xff]   ;;  %vm403_vm1 = vcmask 261120   ;;  %v582_v29 = vlaneseq }
  0x8c   : > { %1702 = vsyncadd (%p2289_p3), [#allocation9], 4294967040  ;;  %1333 = vmatprep.subr.bf16.mxu1 %v1741_v0  ;;  %1325 = vmatprep.subr.bf16.mxu0 %v1741_v0  ;;  %v1466_v4 = vld [vmem:[#allocation5 + $0x8] sm:$0xff]   ;;  %v378_v5 = vld [vmem:[%s324_s20] sm:$0xff]  ;;  %s1743_s13 = smov 104   ;;  %s1744_s16 = smov 120  }
  0x8d   : > { %1337 = vmatprep.mubr.msk.bf16.mxu1 %vm1742_vm0, %v1741_v0  ;;  %1329 = vmatprep.mubr.msk.bf16.mxu0 %vm1742_vm0, %v1741_v0  ;;  %v379_v6 = vpack.c.bf16 %v378_v5, %v378_v5  ;;  %v1467_v7 = vld [vmem:[#allocation8] sm:$0xff]   ;;  %v1468_v8 = vld [vmem:[#allocation8 + $0x8] sm:$0xff]   ;;  %v1288_v9 = vld [vmem:[%s2262_s4 + $0x1] ss:$0 sm:$0xff]  ;;  %s1745_s22 = smov 112   ;;  %v583_v33 = vshrl.u32 %v582_v29, 7 }
  0x8e   : > { %1334 = vmatpush3.bf16.msra.mxu1 %v1463_v1  ;;  %1326 = vmatpush3.bf16.msra.mxu0 %v1464_v2  ;;  %v1284_v11 = vld [vmem:[%s2262_s4] ss:$0 sm:$0xff]  ;;  %v1292_v21 = vld [vmem:[%s2262_s4 + $0x2] ss:$0 sm:$0xff]  ;;  %v1746_v27 = vmov 1983009808  }
  0x8f   : > { %1335 = vmatprep.subr.bf16.mxu1 %v1741_v0  ;;  %1327 = vmatprep.subr.bf16.mxu0 %v1741_v0  ;;  %v580_v28 = vunpack.c.l.s4 %v1746_v27  ;;  %v1747_v30 = vmov 1934713408   ;;  %vm717_vm2 = vcmask 60416   ;;  %s2066_s17 = sshll.u32 %s2006_s7, 4  ;;  %s1035_s12 = sand.u32 1, %s1824_s30  }
  0x90   : > { %v612_v31 = vunpack.c.l.s4 %v1747_v30  ;;  %s2078_s10 = sshll.u32 %s1725_s27, 8  ;;  %s369_s18 = scalar_lea.vmem [#allocation11], %s2066_s17 }
  0x91   : > { %v581_v32 = vunpack.c.0.s8 %v580_v28  ;;  %s1072_s20 = sshll.u32 %s369_s18, 4  ;;  %s2085_s11 = scalar_lea.hbm %s2264_s6, %s2078_s10  ;;  %s2087_s20 = int_to_ptr.vmem [resolvable:$true] %s1072_s20 }
  0x92   : > { %1336 = vmatpush3.bf16.msra.mxu1 %v1465_v3  ;;  %1328 = vmatpush3.bf16.msra.mxu0 %v1466_v4  ;;  %v613_v36 = vunpack.c.0.s8 %v612_v31  ;;  %s2102_s15 = scalar_lea.vmem [#allocation10], %s2066_s17 }
  0x93   : > { %1341 = vmatprep.subr.bf16.mxu0 %v1741_v0  ;;  %v2039_v37 = vsub.s32 %v581_v32, %v583_v33  ;;  %s1055_s19 = sshll.u32 %s2102_s15, 4  ;;  %s2146_s19 = int_to_ptr.vmem [resolvable:$true] %s1055_s19 }
  0x94   : > { %v2041_v44 = vsub.s32 %v613_v36, %v583_v33 }
  0x95   : > { %1338 = vmatmul.mubr.msk.bf16.vlgmr.msra.gmra.mrb[0].mxu1 %vm403_vm1, %v379_v6  ;;  %1330 = vmatmul.mubr.msk.bf16.vlgmr.msra.gmra.mrb[0].mxu0 %vm403_vm1, %v379_v6 }
  0x96   : > { %1342 = vmatpush3.bf16.msra.mxu0 %v1467_v7  ;;  %1345 = vmatprep.mubr.msk.bf16.mxu0 %vm1742_vm0, %v1741_v0 }
  0x97   : > { %1343 = vmatprep.subr.bf16.mxu0 %v1741_v0 }
  0x9a   : > { %1344 = vmatpush3.bf16.msra.mxu0 %v1468_v8 }
  0x9d   : > { %1346 = vmatmul.mubr.msk.bf16.vlgmr.msra.gmra.mrb[4].mxu0 %vm403_vm1, %v379_v6 }
 0x168   : > { %v501_v10 = vpop.f32.mrb[0].mxu1  ;;  %v441_v13 = vpop.f32.mrb[0].mxu0 }
 0x169   : > { %v502_v12 = vadd.f32 %v1288_v9, %v501_v10  ;;  %v1339_v14 = vpop.f32.mrb[1].mxu1  ;;  %v1331_v15 = vpop.f32.mrb[1].mxu0  ;;  %v442_v17 = vadd.f32 %v1284_v11, %v441_v13 }
 0x16a   : > { %v504_v16 = vpop.f32.mrb[2].mxu1  ;;  %v444_v18 = vpop.f32.mrb[2].mxu0 }
 0x16b   : > { %729 = vrot.lane.b32.xlu1 %v502_v12, %s1743_s13  ;;  %723 = vrot.lane.b32.xlu0 %v502_v12, %s1744_s16  ;;  %v1340_v19 = vpop.f32.mrb[3].mxu1  ;;  %v1332_v20 = vpop.f32.mrb[3].mxu0 }
 0x16f   : > { %726 = vrot.lane.b32.xlu0 %v502_v12, %s1745_s22  ;;  %568 = vrot.lane.b32.xlu1 %v442_v17, %s1744_s16 }
 0x170   : > { %v561_v22 = vpop.f32.mrb[4].mxu0 }
 0x171   : > { %v1347_v23 = vpop.f32.mrb[5].mxu0  ;;  %v2034_v24 = vadd.f32 %v1292_v21, %v561_v22 }
 0x172   : > { %v564_v25 = vpop.f32.mrb[6].mxu0 }
 0x173   : > { %571 = vrot.lane.b32.xlu0 %v442_v17, %s1745_s22  ;;  %574 = vrot.lane.b32.xlu1 %v442_v17, %s1743_s13  ;;  %v1348_v26 = vpop.f32.mrb[7].mxu0 }
 0x177   : > { %880 = vrot.lane.b32.xlu1 %v2034_v24, %s1745_s22  ;;  %877 = vrot.lane.b32.xlu0 %v2034_v24, %s1744_s16  ;;  %s1583_s16 = scalar_lea.vmem %s2087_s20, 256  ;;  %s1748_s22 = smov [#allocation11]  }
 0x178   : > { %p1584_p5 = scmp.ne.s32.totalorder %s2087_s20, %s1583_s16  ;;  %s1587_s8 = sshll.u32 %s1748_s22, 4  ;;  %s1588_s8 = int_to_ptr.vmem [resolvable:$false] %s1587_s8 }
 0x179   : > { %s1589_s23 = scalar_lea.vmem %s1588_s8, 512  ;;  %p1590_p0 = scmp.lt.s32.totalorder %s2087_s20, %s1588_s8 }
 0x17a   : > { %p1585_p7 = pnand %p1584_p5, %p1951_p10  ;;  %p1591_p2 = scmp.lt.s32.totalorder %s1589_s23, %s1583_s16 }
 0x17b   : > { %883 = vrot.lane.b32.xlu0 %v2034_v24, %s1743_s13  ;;  %s2107_s13 = scalar_lea.sflag [#allocation12], %s1035_s12 }
 0x17c   : > { %p1586_p9 = pneg %p1585_p7  ;;  %p1592_p4 = por %p1591_p2, %p1590_p0 }
 0x17e   : > { %p1593_p8 = pnand %p1592_p4, %p1586_p9 }
 0x1dd   : > { %v730_v34 = vpop.permute.xlu1 %729  ;;  %v724_v35 = vpop.permute.xlu0 %723 }
 0x1de   : > { %v748_v38 = vcombine.low %v724_v35, %v730_v34  ;;  %v749_v39 = vcombine.high %v724_v35, %v730_v34 }
 0x1e0   : > { %v756_v45 = vrot.slane %v748_v38, %v2039_v37  ;;  %v763_v46 = vrot.slane %v749_v39, %v2039_v37 }
 0x1e1   : > { %v727_v40 = vpop.permute.xlu0 %726  ;;  %v569_v41 = vpop.permute.xlu1 %568 }
 0x1e2   : > { %v732_v42 = vcombine.low %v502_v12, %v727_v40  ;;  %v733_v43 = vcombine.high %v502_v12, %v727_v40 }
 0x1e4   : > { %v740_v47 = vrot.slane %v732_v42, %v2039_v37  ;;  %v747_v48 = vrot.slane %v733_v43, %v2039_v37 }
 0x1e5   : > { %v572_v49 = vpop.permute.xlu0 %571  ;;  %v575_v50 = vpop.permute.xlu1 %574 }
 0x1e6   : > { %v764_v51 = vcombine.low %v740_v47, %v756_v45  ;;  %v765_v52 = vcombine.high %v740_v47, %v756_v45  ;;  %v780_v53 = vcombine.low %v747_v48, %v763_v46  ;;  %v781_v54 = vcombine.high %v747_v48, %v763_v46 }
 0x1e7   : > { %v577_v55 = vcombine.low %v442_v17, %v572_v49  ;;  %v578_v56 = vcombine.high %v442_v17, %v572_v49  ;;  %v593_v57 = vcombine.low %v569_v41, %v575_v50  ;;  %v594_v58 = vcombine.high %v569_v41, %v575_v50 }
 0x1e8   : > { %v772_v59 = vrot.slane %v764_v51, %v2041_v44  ;;  %v779_v60 = vrot.slane %v765_v52, %v2041_v44  ;;  %v788_v61 = vrot.slane %v780_v53, %v2041_v44  ;;  %v795_v62 = vrot.slane %v781_v54, %v2041_v44 }
 0x1e9   : > { %v585_v63 = vrot.slane %v577_v55, %v2039_v37  ;;  %v592_v0 = vrot.slane %v578_v56, %v2039_v37  ;;  %v601_v1 = vrot.slane %v593_v57, %v2039_v37  ;;  %v608_v2 = vrot.slane %v594_v58, %v2039_v37  ;;  %v2063_v19 = vpop.permute.xlu0 %877  ;;  %v881_v47 = vpop.permute.xlu1 %880 }
 0x1ea   : > { %v800_v3 = vcombine.low %v772_v59, %v779_v60  ;;  %v1298_v4 = vcombine.high %v772_v59, %v779_v60  ;;  %v816_v5 = vcombine.low %v788_v61, %v795_v62  ;;  %v1299_v6 = vcombine.high %v788_v61, %v795_v62 }
 0x1eb   : > { %v609_v7 = vcombine.low %v585_v63, %v601_v1  ;;  %v610_v8 = vcombine.high %v585_v63, %v601_v1  ;;  %v625_v9 = vcombine.low %v592_v0, %v608_v2  ;;  %v626_v10 = vcombine.high %v592_v0, %v608_v2 }
 0x1ec   : > { %v807_v11 = vrot.slane %v800_v3, %v2039_v37  ;;  %v815_v12 = vrot.slane %v1298_v4, %v2039_v37  ;;  %v823_v13 = vrot.slane %v816_v5, %v2039_v37  ;;  %v831_v14 = vrot.slane %v1299_v6, %v2039_v37 }
 0x1ed   : > { %v617_v15 = vrot.slane %v609_v7, %v2041_v44  ;;  %v624_v16 = vrot.slane %v610_v8, %v2041_v44  ;;  %v633_v17 = vrot.slane %v625_v9, %v2041_v44  ;;  %v640_v18 = vrot.slane %v626_v10, %v2041_v44  ;;  %v884_v48 = vpop.permute.xlu0 %883 }
 0x1ee   : > { %v832_v20 = vcombine.low %v807_v11, %v815_v12  ;;  %v833_v21 = vcombine.high %v807_v11, %v815_v12  ;;  %v848_v22 = vcombine.low %v823_v13, %v831_v14  ;;  %v849_v23 = vcombine.high %v823_v13, %v831_v14 }
 0x1ef   : > { %v645_v25 = vcombine.low %v617_v15, %v624_v16  ;;  %v1296_v26 = vcombine.high %v617_v15, %v624_v16  ;;  %v661_v27 = vcombine.low %v633_v17, %v640_v18  ;;  %v1297_v28 = vcombine.high %v633_v17, %v640_v18 }
 0x1f0   : > { %v840_v29 = vrot.slane %v832_v20, %v2041_v44  ;;  %v847_v30 = vrot.slane %v833_v21, %v2041_v44  ;;  %v856_v31 = vrot.slane %v848_v22, %v2041_v44  ;;  %v863_v32 = vrot.slane %v849_v23, %v2041_v44 }
 0x1f1   : > { %v652_v33 = vrot.slane %v645_v25, %v2039_v37  ;;  %v660_v34 = vrot.slane %v1296_v26, %v2039_v37  ;;  %v668_v35 = vrot.slane %v661_v27, %v2039_v37  ;;  %v676_v36 = vrot.slane %v1297_v28, %v2039_v37 }
 0x1f2   : > { %v864_v38 = vcombine.low %v840_v29, %v856_v31  ;;  %v865_v39 = vcombine.high %v840_v29, %v856_v31  ;;  %v866_v40 = vcombine.low %v847_v30, %v863_v32  ;;  %v867_v41 = vcombine.high %v847_v30, %v863_v32 }
 0x1f3   : > { %v677_v42 = vcombine.low %v652_v33, %v660_v34  ;;  %v678_v43 = vcombine.high %v652_v33, %v660_v34  ;;  %v693_v45 = vcombine.low %v668_v35, %v676_v36  ;;  %v694_v46 = vcombine.high %v668_v35, %v676_v36 }
 0x1f4   : > { %v868_v49 = vpack.c.bf16 %v864_v38, %v864_v38  ;;  %v869_v50 = vpack.c.bf16 %v865_v39, %v865_v39  ;;  %v870_v51 = vpack.c.bf16 %v866_v40, %v866_v40  ;;  %v871_v52 = vpack.c.bf16 %v867_v41, %v867_v41 }
 0x1f5   : > { %v685_v53 = vrot.slane %v677_v42, %v2041_v44  ;;  %v692_v54 = vrot.slane %v678_v43, %v2041_v44  ;;  %v701_v55 = vrot.slane %v693_v45, %v2041_v44  ;;  %v708_v56 = vrot.slane %v694_v46, %v2041_v44 }
 0x1f6   : > { %v886_v57 = vcombine.low %v2034_v24, %v881_v47  ;;  %v887_v58 = vcombine.high %v2034_v24, %v881_v47  ;;  %v902_v59 = vcombine.low %v2063_v19, %v884_v48  ;;  %v903_v60 = vcombine.high %v2063_v19, %v884_v48  ;;  %872 = vst.msk [vmem:[%s369_s18] sm:$0xf] %vm717_vm2, %v868_v49 }
 0x1f7   : > { %873 = vst.msk [vmem:[%s369_s18 + $0x4] sm:$0xf] %vm717_vm2, %v869_v50  ;;  %874 = vst.msk [vmem:[%s369_s18 + $0x8] sm:$0xf] %vm717_vm2, %v870_v51  ;;  %v709_v61 = vcombine.low %v685_v53, %v701_v55  ;;  %v710_v24 = vcombine.high %v685_v53, %v701_v55  ;;  %v711_v62 = vcombine.low %v692_v54, %v708_v56 }
 0x1f8   : > { %875 = vst.msk [vmem:[%s369_s18 + $0xc] sm:$0xf] %vm717_vm2, %v871_v52  ;;  %v712_v63 = vcombine.high %v692_v54, %v708_v56 }
 0x1f9   : > { %1596 = shalt.err (!%p1593_p8)
}
 0x1fa   : > { %s1597_s30 = scalar_lea.hbm %s2085_s11, 256  ;;  %s1601_s27 = scalar_lea.hbm %s2264_s6, 512 }
 0x1fb   : > { %p1598_p1 = scmp.ne.s32.totalorder %s2085_s11, %s1597_s30  ;;  %p1602_p11 = scmp.lt.u32.totalorder %s2085_s11, %s2264_s6 }
 0x1fc   : > { %p1603_p6 = scmp.lt.u32.totalorder %s1601_s27, %s1597_s30  ;;  %p1605_p5 = scmp.lt.u32.totalorder %s1597_s30, %s2085_s11 }
 0x1fd   : > { %p1599_p12 = pnand %p1598_p1, %p1951_p10 }
 0x1fe   : > { %p1604_p3 = por %p1603_p6, %p1602_p11 }
 0x1ff   : > { %p1600_p13 = pneg %p1599_p12 }
 0x200   : > { %p1606_p7 = por %p1605_p5, %p1604_p3 }
 0x202   : > { %p1607_p9 = pnand %p1606_p7, %p1600_p13 }
 0x204   : > { %1610 = shalt.err (!%p1607_p9)
}
 0x205   : > { %s1749_s16 = smov 64   ;;  %s1750_s8 = smov 4   ;;  %v894_v0 = vrot.slane %v886_v57, %v2039_v37  ;;  %v901_v1 = vrot.slane %v887_v58, %v2039_v37  ;;  %v910_v2 = vrot.slane %v902_v59, %v2039_v37  ;;  %v917_v3 = vrot.slane %v903_v60, %v2039_v37 }
 0x206   : > { %1364 = dma.vmem_to_hbm [thread:$0]  (%p1951_p10), %s2087_s20, 256, %s2085_s11, %s2107_s13, %s1749_s16, %s1749_s16, %s1750_s8   ;;  %v713_v4 = vpack.c.bf16 %v709_v61, %v709_v61  ;;  %v714_v5 = vpack.c.bf16 %v710_v24, %v710_v24  ;;  %v715_v6 = vpack.c.bf16 %v711_v62, %v711_v62  ;;  %v716_v7 = vpack.c.bf16 %v712_v63, %v712_v63 }
 0x207   : > { %s2142_s20 = scalar_lea.hbm %s2263_s5, %s2078_s10  ;;  %v918_v8 = vcombine.low %v894_v0, %v910_v2  ;;  %v919_v9 = vcombine.high %v894_v0, %v910_v2  ;;  %v934_v10 = vcombine.low %v901_v1, %v917_v3  ;;  %v935_v11 = vcombine.high %v901_v1, %v917_v3  ;;  %s1031_s11 = scalar_lea.sflag [#allocation4], %s2006_s7 }
 0x208   : > { %718 = vst.msk [vmem:[%s2102_s15] sm:$0xf] %vm717_vm2, %v713_v4  ;;  %719 = vst.msk [vmem:[%s2102_s15 + $0x4] sm:$0xf] %vm717_vm2, %v714_v5  ;;  %s1611_s12 = scalar_lea.vmem %s2146_s19, 256  ;;  %s1751_s18 = smov [#allocation10]  }
 0x209   : > { %720 = vst.msk [vmem:[%s2102_s15 + $0x8] sm:$0xf] %vm717_vm2, %v715_v6  ;;  %721 = vst.msk [vmem:[%s2102_s15 + $0xc] sm:$0xf] %vm717_vm2, %v716_v7  ;;  %v926_v12 = vrot.slane %v918_v8, %v2041_v44  ;;  %v933_v13 = vrot.slane %v919_v9, %v2041_v44  ;;  %v942_v14 = vrot.slane %v934_v10, %v2041_v44  ;;  %p1612_p0 = scmp.ne.s32.totalorder %s2146_s19, %s1611_s12  ;;  %s1615_s27 = sshll.u32 %s1751_s18, 4  ;;  %s1616_s27 = int_to_ptr.vmem [resolvable:$false] %s1615_s27 }
 0x20a   : > { %v949_v15 = vrot.slane %v935_v11, %v2041_v44  ;;  %s1617_s9 = scalar_lea.vmem %s1616_s27, 512  ;;  %p1618_p8 = scmp.lt.s32.totalorder %s2146_s19, %s1616_s27 }
 0x20b   : > { %p1613_p2 = pnand %p1612_p0, %p1951_p10  ;;  %p1619_p1 = scmp.lt.s32.totalorder %s1617_s9, %s1611_s12 }
 0x20d   : > { %p1614_p4 = pneg %p1613_p2  ;;  %p1620_p12 = por %p1619_p1, %p1618_p8 }
 0x20f   : > { %p1621_p13 = pnand %p1620_p12, %p1614_p4 }
 0x211   : > { %1624 = shalt.err (!%p1621_p13)
}
 0x212   : > { %s1625_s15 = scalar_lea.hbm %s2142_s20, 256  ;;  %s1629_s30 = scalar_lea.hbm %s2263_s5, 512 }
 0x213   : > { %p1626_p11 = scmp.ne.s32.totalorder %s2142_s20, %s1625_s15  ;;  %p1630_p5 = scmp.lt.u32.totalorder %s2142_s20, %s2263_s5 }
 0x214   : > { %p1631_p7 = scmp.lt.u32.totalorder %s1629_s30, %s1625_s15  ;;  %p1633_p0 = scmp.lt.u32.totalorder %s1625_s15, %s2142_s20 }
 0x215   : > { %p1627_p6 = pnand %p1626_p11, %p1951_p10 }
 0x216   : > { %p1632_p9 = por %p1631_p7, %p1630_p5 }
 0x217   : > { %p1628_p3 = pneg %p1627_p6 }
 0x218   : > { %p1634_p2 = por %p1633_p0, %p1632_p9 }
 0x21a   : > { %p1635_p4 = pnand %p1634_p2, %p1628_p3 }
 0x21c   : > { %1638 = shalt.err (!%p1635_p4)
}
 0x21d   : > { %1363 = dma.vmem_to_hbm [thread:$0]  (%p1951_p10), %s2146_s19, 256, %s2142_s20, %s1031_s11, %s1749_s16, %s1749_s16, %s1750_s8   ;;  %v954_v16 = vcombine.low %v926_v12, %v933_v13  ;;  %v1300_v17 = vcombine.high %v926_v12, %v933_v13  ;;  %v970_v18 = vcombine.low %v942_v14, %v949_v15  ;;  %v1301_v19 = vcombine.high %v942_v14, %v949_v15 }
 0x21e   : > { %s376_s7 = scalar_lea.vmem [#allocation13], %s2066_s17  ;;  %s2290_s12 = sld [smem:[#allocation21_spill]] }
 0x21f   : > { %v961_v20 = vrot.slane %v954_v16, %v2039_v37  ;;  %v969_v21 = vrot.slane %v1300_v17, %v2039_v37  ;;  %v977_v22 = vrot.slane %v970_v18, %v2039_v37  ;;  %v985_v23 = vrot.slane %v1301_v19, %v2039_v37  ;;  %s1089_s19 = sshll.u32 %s376_s7, 4  ;;  %s2202_s19 = int_to_ptr.vmem [resolvable:$true] %s1089_s19 }
 0x220   : > { %s1639_s17 = scalar_lea.vmem %s2202_s19, 256 }
 0x221   : > { %v986_v25 = vcombine.low %v961_v20, %v969_v21  ;;  %v987_v26 = vcombine.high %v961_v20, %v969_v21  ;;  %v1002_v27 = vcombine.low %v977_v22, %v985_v23  ;;  %v1003_v28 = vcombine.high %v977_v22, %v985_v23  ;;  %p1640_p8 = scmp.ne.s32.totalorder %s2202_s19, %s1639_s17 }
 0x223   : > { %v994_v29 = vrot.slane %v986_v25, %v2041_v44  ;;  %v1001_v30 = vrot.slane %v987_v26, %v2041_v44  ;;  %v1010_v31 = vrot.slane %v1002_v27, %v2041_v44  ;;  %v1017_v32 = vrot.slane %v1003_v28, %v2041_v44  ;;  %p1641_p1 = pnand %p1640_p8, %p1951_p10 }
 0x224   : > { %s2200_s9 = scalar_lea.hbm %s2290_s12, %s2078_s10  ;;  %s1752_s10 = smov [#allocation13]  }
 0x225   : > { %v1018_v33 = vcombine.low %v994_v29, %v1010_v31  ;;  %v1019_v34 = vcombine.high %v994_v29, %v1010_v31  ;;  %v1020_v35 = vcombine.low %v1001_v30, %v1017_v32  ;;  %v1021_v37 = vcombine.high %v1001_v30, %v1017_v32  ;;  %p1642_p12 = pneg %p1641_p1  ;;  %s1643_s15 = sshll.u32 %s1752_s10, 4  ;;  %s1644_s15 = int_to_ptr.vmem [resolvable:$false] %s1643_s15 }
 0x226   : > { %s1645_s22 = scalar_lea.vmem %s1644_s15, 512  ;;  %p1646_p13 = scmp.lt.s32.totalorder %s2202_s19, %s1644_s15 }
 0x227   : > { %v1022_v36 = vpack.c.bf16 %v1018_v33, %v1018_v33  ;;  %v1023_v38 = vpack.c.bf16 %v1019_v34, %v1019_v34  ;;  %v1024_v39 = vpack.c.bf16 %v1020_v35, %v1020_v35  ;;  %v1025_v40 = vpack.c.bf16 %v1021_v37, %v1021_v37  ;;  %p1647_p11 = scmp.lt.s32.totalorder %s1645_s22, %s1639_s17 }
 0x229   : > { %1026 = vst.msk [vmem:[%s376_s7] sm:$0xf] %vm717_vm2, %v1022_v36  ;;  %1027 = vst.msk [vmem:[%s376_s7 + $0x4] sm:$0xf] %vm717_vm2, %v1023_v38  ;;  %p1648_p6 = por %p1647_p11, %p1646_p13 }
 0x22a   : > { %1028 = vst.msk [vmem:[%s376_s7 + $0x8] sm:$0xf] %vm717_vm2, %v1024_v39  ;;  %1029 = vst.msk [vmem:[%s376_s7 + $0xc] sm:$0xf] %vm717_vm2, %v1025_v40 }
 0x22b   : > { %p1649_p3 = pnand %p1648_p6, %p1642_p12 }
 0x22d   : > { %1652 = shalt.err (!%p1649_p3)
}
 0x22e   : > { %s1653_s23 = scalar_lea.hbm %s2200_s9, 256  ;;  %s1657_s27 = scalar_lea.hbm %s2290_s12, 512 }
 0x22f   : > { %p1654_p5 = scmp.ne.s32.totalorder %s2200_s9, %s1653_s23  ;;  %p1658_p0 = scmp.lt.u32.totalorder %s2200_s9, %s2290_s12 }
 0x230   : > { %p1659_p2 = scmp.lt.u32.totalorder %s1657_s27, %s1653_s23  ;;  %p1661_p8 = scmp.lt.u32.totalorder %s1653_s23, %s2200_s9 }
 0x231   : > { %p1655_p7 = pnand %p1654_p5, %p1951_p10 }
 0x232   : > { %p1660_p4 = por %p1659_p2, %p1658_p0 }
 0x233   : > { %p1656_p9 = pneg %p1655_p7 }
 0x234   : > { %p1662_p1 = por %p1661_p8, %p1660_p4 }
 0x236   : > { %p1663_p12 = pnand %p1662_p1, %p1656_p9 }
 0x238   : > { %1666 = shalt.err (!%p1663_p12)
}
 0x239   : > { %1365 = dma.vmem_to_hbm [thread:$0]  (%p1951_p10), %s2202_s19, 256, %s2200_s9, %s2107_s13, %s1749_s16, %s1749_s16, %s1750_s8  }
 0x23a PF: > { %s2291_s11 = sld [smem:[#allocation19_spill]]  ;;  %s2292_s17 = sld [smem:[#allocation20_spill]] }
 0x23b   : > { %p2294_p11 = scmp.ge.s32.totalorder %s1733_s29, 2 }
 0x240   : > { %s1104_s10 = sand.u32 1, %s2291_s11   ;;  %p2293_p13 = scmp.ne.s32.totalorder %s2292_s17, 0 }
 0x241   : > { %s1105_s15 = scalar_lea.sflag [#allocation4], %s1104_s10 }
 0x242   : > { %p1384_p6 = pnand %p2294_p11, %p2293_p13 }
 0x244   : > { %1704 = dma.done.wait (!%p1384_p6), %s1105_s15, 256  }
 0x245   : > { %1706 = vsyncadd (!%p1384_p6), %s1105_s15, 4294967040  ;;  %s2295_s24 = sadd.s32 4294967294, %s1733_s29  }
 0x246   : > { %s1113_s22 = sand.u32 1, %s2295_s24  }
 0x247   : > { %s1114_s23 = scalar_lea.sflag [#allocation12], %s1113_s22 }
 0x248   : > { %1708 = dma.done.wait (!%p1384_p6), %s1114_s23, 512  }
 0x249   : > { %1710 = vsyncadd (!%p1384_p6), %s1114_s23, 4294966784  ;;  %s29_s29 = sadd.s32 1, %s1733_s29   ;;  %s2296_s24 = smov %s1717_s25 }
 0x24a   : > { %p26_p10 = scmp.ge.s32.totalorder %s29_s29, 4   ;;  %s2297_s25 = smov %s1721_s26 }
 0x24b   : > { %s2298_s26 = smov %s1963_s21  ;;  %s2299_s27 = smov %s1729_s28 }
 0x24c   : > { %s2300_s28 = smov %s2302_s14  ;;  %28 = sbr.rel (!%p26_p10) target bundleno = 12 (0xc), region = 129 }
 0x253   :  { %1128 = vsyncpa [#allocation3], 1 }
 0x254   :  { %1130 = vsyncpa [#allocation3 + $0x1], 1 }
 0x255   :  { %1131 = vsyncpa [#allocation6], 1 }
 0x256   :  { %1132 = vsyncpa [#allocation9], 1 }
 0x257   :  { %1133 = vsyncpa [#allocation4], 1 }
 0x258   :  { %1135 = vsyncpa [#allocation4 + $0x1], 1 }
 0x259   :  { %1136 = vsyncpa [#allocation12], 1 }
 0x25a   :  { %1138 = vsyncpa [#allocation12 + $0x1], 1 }

// kernel: tpu_custom_call.1
= control target key start
LH: loop header
LB: loop body
LE: loop exit
PB: predicated region body
PF: predicated region fallthrough
CT: control target
= control target key end

     0   :  { %s2258_s0 = inlined_call_operand.hbm [shape: f32[2,8,32], index: 0, kind: input, shape index: {}]   ;;  %s2259_s1 = inlined_call_operand.hbm [shape: bf16[32,32], index: 1, kind: input, shape index: {}]   ;;  %s2260_s2 = inlined_call_operand.hbm [shape: bf16[32,32], index: 2, kind: input, shape index: {}]   ;;  %s2261_s3 = inlined_call_operand.hbm [shape: bf16[32,32], index: 3, kind: input, shape index: {}]   ;;  %s2262_s4 = inlined_call_operand.vmem [shape: f32[3,32], index: 4, kind: input, shape index: {}]   ;;  %s2263_s5 = inlined_call_operand.hbm [shape: bf16[2,4,8,8], index: 5, kind: output, shape index: {0}]   ;;  %s2264_s6 = inlined_call_operand.hbm [shape: bf16[2,4,8,8], index: 6, kind: output, shape index: {1}]   ;;  %s2265_s7 = inlined_call_operand.hbm [shape: bf16[2,4,8,8], index: 7, kind: output, shape index: {2}]  }
   0x1   :  { %2273 = sst [smem:[#allocation21_spill]] %s2265_s7 }
   0x2   :  { %13 = vsyncpa [#allocation3], 0 }
   0x3   :  { %15 = vsyncpa [#allocation3 + $0x1], 0 }
   0x4   :  { %16 = vsyncpa [#allocation6], 0 }
   0x5   :  { %17 = vsyncpa [#allocation9], 0 }
   0x6   :  { %18 = vsyncpa [#allocation4], 0 }
   0x7   :  { %20 = vsyncpa [#allocation4 + $0x1], 0 }
   0x8   :  { %21 = vsyncpa [#allocation12], 0 }
   0x9   :  { %23 = vsyncpa [#allocation12 + $0x1], 0  ;;  %s1793_s24 = smov 0   ;;  %s1795_s25 = smov 0  }
   0xa   :  { %s1797_s26 = smov 0   ;;  %s1799_s27 = smov 0  }
   0xb   :  { %s1801_s28 = smov 0   ;;  %s1803_s29 = smov 0  }
   0xc LB: > { %2274 = sst [smem:[#allocation19_spill]] %s1713_s24  ;;  %s1824_s30 = sadd.s32 4294967295, %s1733_s29   ;;  %s1733_s29 = sphi %s1803_s29, %s29_s29   ;;  %s1729_s28 = sphi %s1801_s28, %s2300_s28   ;;  %s1725_s27 = sphi %s1799_s27, %s2299_s27   ;;  %s1721_s26 = sphi %s1797_s26, %s2298_s26   ;;  %s1717_s25 = sphi %s1795_s25, %s2297_s25   ;;  %s1713_s24 = sphi %s1793_s24, %s2296_s24  }
   0xd   : > { %s2267_s8 = sadd.s32 4294967294, %s1733_s29   ;;  %p63_p0 = scmp.ne.s32.totalorder %s1717_s25, %s1713_s24 }
   0xe   : > { %p2266_p1 = scmp.eq.s32.totalorder %s1824_s30, 0  ;;  %p179_p3 = scmp.eq.s32.totalorder %s2267_s8, 1 }
   0xf   : > { %p1269_p5 = scmp.ge.s32.totalorder %s1733_s29, 1  ;;  %p242_p7 = scmp.lt.s32.totalorder %s1733_s29, 3 }
  0x10   : > { %p1835_p4 = por %p2266_p1, %p63_p0  ;;  %p1840_p6 = por %p179_p3, %p63_p0 }
  0x11   : > { %p1845_p8 = pnand %p1269_p5, %p242_p7  ;;  %s1735_s12 = smov [#allocation5]  }
  0x12   : > { %s2275_s9 = scalar_select %p1835_p4, 1, 0 }
  0x13   : > { %s2276_s10 = scalar_select %p1840_p6, 1, 0 }
  0x14   : > { %s2278_s11 = scalar_select %p1845_p8, 1, 0 }
  0x15   : > { %2277 = sst [smem:[#allocation20_spill]] %s2276_s10  ;;  %s254_s13 = sshll.u32 %s1735_s12, 4  ;;  %s1849_s13 = int_to_ptr.vmem [resolvable:$true] %s254_s13 }
  0x16   : > { %p1369_p9 = pneg %p1845_p8  ;;  %s1736_s15 = smov [#allocation7]  }
  0x17   : > { %s267_s16 = sshll.u32 %s1736_s15, 4  ;;  %s1737_s17 = smov [#allocation8]   ;;  %s1860_s16 = int_to_ptr.vmem [resolvable:$true] %s267_s16 }
  0x18   : > { %p1856_p11 = pnand %p1369_p9, %p2266_p1  ;;  %s1862_s18 = sshll.u32 %s1737_s17, 4  ;;  %s281_s18 = int_to_ptr.vmem [resolvable:$true] %s1862_s18 }
  0x19   : > { %s1469_s21 = scalar_lea.hbm %s2259_s1, 256 }
  0x1a   : > { %p1470_p12 = scmp.ne.s32.totalorder %s2259_s1, %s1469_s21  ;;  %p1872_p13 = pneg %p1856_p11 }
  0x1b   : > { %p1476_p5 = scmp.lt.u32.totalorder %s1469_s21, %s2259_s1 }
  0x1c   : > { %p1472_p0 = pnand %p1872_p13, %p1470_p12 }
  0x1e   : > { %p1473_p3 = pneg %p1472_p0 }
  0x20   : > { %p1478_p7 = pnand %p1476_p5, %p1473_p3 }
  0x22   : > { %1481 = shalt.err (!%p1478_p7)
}
  0x23   : > { %s1482_s19 = scalar_lea.vmem %s1849_s13, 256  ;;  %p1490_p2 = scmp.lt.s32.totalorder %s1849_s13, %s1849_s13 }
  0x24   : > { %p1483_p9 = scmp.ne.s32.totalorder %s1849_s13, %s1482_s19  ;;  %p1491_p6 = scmp.lt.s32.totalorder %s1482_s19, %s1482_s19 }
  0x26   : > { %p1485_p10 = pnand %p1483_p9, %p1872_p13  ;;  %p1492_p12 = por %p1491_p6, %p1490_p2 }
  0x28   : > { %p1486_p1 = pneg %p1485_p10 }
  0x2a   : > { %p1493_p0 = pnand %p1492_p12, %p1486_p1 }
  0x2c   : > { %1496 = shalt.err (!%p1493_p0)
}
  0x2d   : > { %s1738_s20 = smov 64   ;;  %s1739_s21 = smov 4  }
  0x2e   : > { %1372 = dma.hbm_to_vmem [thread:$0]  (!%p1856_p11), %s2259_s1, 256, %s1849_s13, [#allocation6], %s1738_s20, %s1738_s20, %s1739_s21  }
  0x2f   : > { %s1497_s19 = scalar_lea.hbm %s2260_s2, 256 }
  0x30   : > { %p1498_p1 = scmp.ne.s32.totalorder %s2260_s2, %s1497_s19  ;;  %p1504_p10 = scmp.lt.u32.totalorder %s1497_s19, %s2260_s2 }
  0x32   : > { %p1500_p2 = pnand %p1498_p1, %p1872_p13 }
  0x34   : > { %p1501_p6 = pneg %p1500_p2 }
  0x36   : > { %p1506_p3 = pnand %p1504_p10, %p1501_p6 }
  0x38   : > { %1509 = shalt.err (!%p1506_p3)
}
  0x39   : > { %s1510_s13 = scalar_lea.vmem %s1860_s16, 256  ;;  %p1518_p12 = scmp.lt.s32.totalorder %s1860_s16, %s1860_s16 }
  0x3a   : > { %p1511_p5 = scmp.ne.s32.totalorder %s1860_s16, %s1510_s13  ;;  %p1519_p0 = scmp.lt.s32.totalorder %s1510_s13, %s1510_s13 }
  0x3c   : > { %p1513_p7 = pnand %p1511_p5, %p1872_p13  ;;  %p1520_p1 = por %p1519_p0, %p1518_p12 }
  0x3e   : > { %p1514_p9 = pneg %p1513_p7 }
  0x40   : > { %p1521_p2 = pnand %p1520_p1, %p1514_p9 }
  0x42   : > { %1524 = shalt.err (!%p1521_p2)
}
  0x43   : > { %1375 = dma.hbm_to_vmem [thread:$0]  (!%p1856_p11), %s2260_s2, 256, %s1860_s16, [#allocation6], %s1738_s20, %s1738_s20, %s1739_s21  }
  0x44   : > { %s1525_s22 = scalar_lea.hbm %s2261_s3, 256 }
  0x45   : > { %p1526_p6 = scmp.ne.s32.totalorder %s2261_s3, %s1525_s22  ;;  %p1532_p5 = scmp.lt.u32.totalorder %s1525_s22, %s2261_s3 }
  0x47   : > { %p1528_p10 = pnand %p1526_p6, %p1872_p13 }
  0x49   : > { %p1529_p3 = pneg %p1528_p10 }
  0x4b   : > { %p1534_p7 = pnand %p1532_p5, %p1529_p3 }
  0x4d   : > { %1537 = shalt.err (!%p1534_p7)
}
  0x4e   : > { %s1538_s13 = scalar_lea.vmem %s281_s18, 256  ;;  %p1546_p1 = scmp.lt.s32.totalorder %s281_s18, %s281_s18 }
  0x4f   : > { %p1539_p9 = scmp.ne.s32.totalorder %s281_s18, %s1538_s13  ;;  %p1547_p2 = scmp.lt.s32.totalorder %s1538_s13, %s1538_s13 }
  0x51   : > { %p1541_p12 = pnand %p1539_p9, %p1872_p13  ;;  %p1548_p4 = por %p1547_p2, %p1546_p1 }
  0x53   : > { %p1542_p0 = pneg %p1541_p12 }
  0x55   : > { %p1549_p8 = pnand %p1548_p4, %p1542_p0 }
  0x57   : > { %1552 = shalt.err (!%p1549_p8)
}
  0x58   : > { %1378 = dma.hbm_to_vmem [thread:$0]  (!%p1856_p11), %s2261_s3, 256, %s281_s18, [#allocation9], %s1738_s20, %s1738_s20, %s1739_s21  }
  0x59   : > { %s50_s12 = sadd.s32 1, %s1721_s26  ;;  %s41_s14 = sadd.s32 1, %s1729_s28 }
  0x5a   : > { %p57_p4 = scmp.ne.s32.totalorder %s1721_s26, %s1717_s25  ;;  %p43_p8 = scmp.ge.s32.totalorder %s41_s14, 2 }
  0x5b   : > { %p58_p13 = scmp.eq.s32.totalorder %s1733_s29, 0  ;;  %p2281_p6 = scmp.eq.s32.totalorder %s1824_s30, 1 }
  0x5c   : > { %p1396_p3 = scmp.lt.s32.totalorder %s1733_s29, 2  ;;  %s2302_s14 = smov (%p43_p8, %s41_s14), 0 }
  0x5d   : > { %p1951_p10 = por %p2281_p6, %p57_p4  ;;  %p59_p5 = por %p58_p13, %p57_p4 }
  0x5e   : > { %s297_s8 = sand.u32 1, %s1721_s26   ;;  %s45_s10 = ssub.s32 %s1729_s28, %s2302_s14 }
  0x5f   : > { %p48_p7 = scmp.eq.s32.totalorder %s45_s10, 0  ;;  %s1274_s18 = sshll.u32 %s297_s8, 3 }
  0x60   : > { %s1275_s20 = sshll.u32 %s1729_s28, 7  ;;  %s301_s17 = scalar_lea.vmem [#allocation2], %s1274_s18 }
  0x61   : > { %s1963_s21 = scalar_select %p48_p7, %s1721_s26, %s50_s12  }
  0x62   : > { %s1968_s15 = scalar_lea.hbm %s2258_s0, %s1275_s20  ;;  %s309_s19 = sshll.u32 %s301_s17, 4  ;;  %s1970_s19 = int_to_ptr.vmem [resolvable:$true] %s309_s19 }
  0x63   : > { %p1974_p11 = pnand %p1396_p3, %p59_p5  ;;  %s298_s16 = scalar_lea.sflag [#allocation3], %s297_s8 }
  0x64   : > { %s1553_s7 = scalar_lea.hbm %s1968_s15, 128  ;;  %s1558_s18 = scalar_lea.hbm %s2258_s0, 256 }
  0x65   : > { %p1554_p9 = scmp.ne.s32.totalorder %s1968_s15, %s1553_s7  ;;  %p1555_p12 = pneg %p1974_p11 }
  0x66   : > { %p1559_p2 = scmp.lt.u32.totalorder %s1968_s15, %s2258_s0  ;;  %p1560_p4 = scmp.lt.u32.totalorder %s1558_s18, %s1553_s7 }
  0x67   : > { %p1556_p0 = pnand %p1555_p12, %p1554_p9  ;;  %p1562_p13 = scmp.lt.u32.totalorder %s1553_s7, %s1968_s15 }
  0x68   : > { %p1561_p8 = por %p1560_p4, %p1559_p2 }
  0x69   : > { %p1557_p1 = pneg %p1556_p0 }
  0x6a   : > { %p1563_p6 = por %p1562_p13, %p1561_p8 }
  0x6c   : > { %p1564_p3 = pnand %p1563_p6, %p1557_p1 }
  0x6e   : > { %1567 = shalt.err (!%p1564_p3)
}
  0x6f   : > { %s1568_s8 = scalar_lea.vmem %s1970_s19, 128  ;;  %s1740_s23 = smov [#allocation2]  }
  0x70   : > { %p1569_p5 = scmp.ne.s32.totalorder %s1970_s19, %s1568_s8  ;;  %s1573_s17 = sshll.u32 %s1740_s23, 4  ;;  %s1574_s17 = int_to_ptr.vmem [resolvable:$false] %s1573_s17 }
  0x71   : > { %s1575_s12 = scalar_lea.vmem %s1574_s17, 256  ;;  %p1576_p0 = scmp.lt.s32.totalorder %s1970_s19, %s1574_s17 }
  0x72   : > { %p1571_p7 = pnand %p1569_p5, %p1555_p12  ;;  %p1577_p2 = scmp.lt.s32.totalorder %s1575_s12, %s1568_s8 }
  0x74   : > { %p1572_p9 = pneg %p1571_p7  ;;  %p1578_p4 = por %p1577_p2, %p1576_p0 }
  0x76   : > { %p1579_p8 = pnand %p1578_p4, %p1572_p9 }
  0x78   : > { %1582 = shalt.err (!%p1579_p8)
}
  0x79   : > { %1382 = dma.hbm_to_vmem [thread:$0]  (!%p1974_p11), %s1968_s15, 128, %s1970_s19, %s298_s16  }
  0x7a   : > { %p2284_p1 = scmp.ne.s32.totalorder %s2278_s11, 0 }
  0x7b   : > { %s2006_s7 = sand.u32 (!%p2284_p1), 1, %s1717_s25   ;;  %p2285_p12 = scmp.ne.s32.totalorder (!%p2284_p1), %s2275_s9, 0 }
  0x7c   : > { %318 = sbr.rel (%p2284_p1) target bundleno = 570 (0x23a), region = 40  ;;  %s1277_s10 = sshll.u32 (!%p2284_p1), %s2006_s7, 3 }
  0x7d   : > { %s321_s18 = scalar_lea.sflag (!%p2284_p1), [#allocation3], %s2006_s7  ;;  %s324_s20 = scalar_lea.vmem (!%p2284_p1), [#allocation2], %s1277_s10 }
  0x83   : > { %1692 = dma.done.wait (%p2285_p12), %s321_s18, 128  }
  0x84   : > { %1694 = vsyncadd (%p2285_p12), %s321_s18, 4294967168  ;;  %p2286_p13 = scmp.eq.s32.totalorder %s1824_s30, 0 }
  0x86   : > { %1696 = dma.done.wait (%p2286_p13), [#allocation6], 512   ;;  %p2287_p11 = pmov %p2286_p13 }
  0x88   : > { %1698 = vsyncadd (%p2287_p11), [#allocation6], 4294966784  ;;  %p2288_p6 = pmov %p2287_p11 }
  0x8a   : > { %1700 = dma.done.wait (%p2288_p6), [#allocation9], 256   ;;  %p2289_p3 = pmov %p2288_p6 }
  0x8b   : > { %v1741_v0 = vmov 0.0   ;;  %vm1742_vm0 = vmmov 0   ;;  %v1463_v1 = vld [vmem:[#allocation7] sm:$0xff]   ;;  %v1464_v2 = vld [vmem:[#allocation5] sm:$0xff]   ;;  %v1465_v3 = vld [vmem:[#allocation7 + $0x8] sm:$0xff]   ;;  %vm403_vm1 = vcmask 261120   ;;  %v582_v29 = vlaneseq }
  0x8c   : > { %1702 = vsyncadd (%p2289_p3), [#allocation9], 4294967040  ;;  %1333 = vmatprep.subr.bf16.mxu1 %v1741_v0  ;;  %1325 = vmatprep.subr.bf16.mxu0 %v1741_v0  ;;  %v1466_v4 = vld [vmem:[#allocation5 + $0x8] sm:$0xff]   ;;  %v378_v5 = vld [vmem:[%s324_s20] sm:$0xff]  ;;  %s1743_s13 = smov 104   ;;  %s1744_s16 = smov 120  }
  0x8d   : > { %1337 = vmatprep.mubr.msk.bf16.mxu1 %vm1742_vm0, %v1741_v0  ;;  %1329 = vmatprep.mubr.msk.bf16.mxu0 %vm1742_vm0, %v1741_v0  ;;  %v379_v6 = vpack.c.bf16 %v378_v5, %v378_v5  ;;  %v1467_v7 = vld [vmem:[#allocation8] sm:$0xff]   ;;  %v1468_v8 = vld [vmem:[#allocation8 + $0x8] sm:$0xff]   ;;  %v1288_v9 = vld [vmem:[%s2262_s4 + $0x1] ss:$0 sm:$0xff]  ;;  %s1745_s22 = smov 112   ;;  %v583_v33 = vshrl.u32 %v582_v29, 7 }
  0x8e   : > { %1334 = vmatpush3.bf16.msra.mxu1 %v1463_v1  ;;  %1326 = vmatpush3.bf16.msra.mxu0 %v1464_v2  ;;  %v1284_v11 = vld [vmem:[%s2262_s4] ss:$0 sm:$0xff]  ;;  %v1292_v21 = vld [vmem:[%s2262_s4 + $0x2] ss:$0 sm:$0xff]  ;;  %v1746_v27 = vmov 1983009808  }
  0x8f   : > { %1335 = vmatprep.subr.bf16.mxu1 %v1741_v0  ;;  %1327 = vmatprep.subr.bf16.mxu0 %v1741_v0  ;;  %v580_v28 = vunpack.c.l.s4 %v1746_v27  ;;  %v1747_v30 = vmov 1934713408   ;;  %vm717_vm2 = vcmask 60416   ;;  %s2066_s17 = sshll.u32 %s2006_s7, 4  ;;  %s1035_s12 = sand.u32 1, %s1824_s30  }
  0x90   : > { %v612_v31 = vunpack.c.l.s4 %v1747_v30  ;;  %s2078_s10 = sshll.u32 %s1725_s27, 8  ;;  %s369_s18 = scalar_lea.vmem [#allocation11], %s2066_s17 }
  0x91   : > { %v581_v32 = vunpack.c.0.s8 %v580_v28  ;;  %s1072_s20 = sshll.u32 %s369_s18, 4  ;;  %s2085_s11 = scalar_lea.hbm %s2264_s6, %s2078_s10  ;;  %s2087_s20 = int_to_ptr.vmem [resolvable:$true] %s1072_s20 }
  0x92   : > { %1336 = vmatpush3.bf16.msra.mxu1 %v1465_v3  ;;  %1328 = vmatpush3.bf16.msra.mxu0 %v1466_v4  ;;  %v613_v36 = vunpack.c.0.s8 %v612_v31  ;;  %s2102_s15 = scalar_lea.vmem [#allocation10], %s2066_s17 }
  0x93   : > { %1341 = vmatprep.subr.bf16.mxu0 %v1741_v0  ;;  %v2039_v37 = vsub.s32 %v581_v32, %v583_v33  ;;  %s1055_s19 = sshll.u32 %s2102_s15, 4  ;;  %s2146_s19 = int_to_ptr.vmem [resolvable:$true] %s1055_s19 }
  0x94   : > { %v2041_v44 = vsub.s32 %v613_v36, %v583_v33 }
  0x95   : > { %1338 = vmatmul.mubr.msk.bf16.vlgmr.msra.gmra.mrb[0].mxu1 %vm403_vm1, %v379_v6  ;;  %1330 = vmatmul.mubr.msk.bf16.vlgmr.msra.gmra.mrb[0].mxu0 %vm403_vm1, %v379_v6 }
  0x96   : > { %1342 = vmatpush3.bf16.msra.mxu0 %v1467_v7  ;;  %1345 = vmatprep.mubr.msk.bf16.mxu0 %vm1742_vm0, %v1741_v0 }
  0x97   : > { %1343 = vmatprep.subr.bf16.mxu0 %v1741_v0 }
  0x9a   : > { %1344 = vmatpush3.bf16.msra.mxu0 %v1468_v8 }
  0x9d   : > { %1346 = vmatmul.mubr.msk.bf16.vlgmr.msra.gmra.mrb[4].mxu0 %vm403_vm1, %v379_v6 }
 0x168   : > { %v501_v10 = vpop.f32.mrb[0].mxu1  ;;  %v441_v13 = vpop.f32.mrb[0].mxu0 }
 0x169   : > { %v502_v12 = vadd.f32 %v1288_v9, %v501_v10  ;;  %v1339_v14 = vpop.f32.mrb[1].mxu1  ;;  %v1331_v15 = vpop.f32.mrb[1].mxu0  ;;  %v442_v17 = vadd.f32 %v1284_v11, %v441_v13 }
 0x16a   : > { %v504_v16 = vpop.f32.mrb[2].mxu1  ;;  %v444_v18 = vpop.f32.mrb[2].mxu0 }
 0x16b   : > { %729 = vrot.lane.b32.xlu1 %v502_v12, %s1743_s13  ;;  %723 = vrot.lane.b32.xlu0 %v502_v12, %s1744_s16  ;;  %v1340_v19 = vpop.f32.mrb[3].mxu1  ;;  %v1332_v20 = vpop.f32.mrb[3].mxu0 }
 0x16f   : > { %726 = vrot.lane.b32.xlu0 %v502_v12, %s1745_s22  ;;  %568 = vrot.lane.b32.xlu1 %v442_v17, %s1744_s16 }
 0x170   : > { %v561_v22 = vpop.f32.mrb[4].mxu0 }
 0x171   : > { %v1347_v23 = vpop.f32.mrb[5].mxu0  ;;  %v2034_v24 = vadd.f32 %v1292_v21, %v561_v22 }
 0x172   : > { %v564_v25 = vpop.f32.mrb[6].mxu0 }
 0x173   : > { %571 = vrot.lane.b32.xlu0 %v442_v17, %s1745_s22  ;;  %574 = vrot.lane.b32.xlu1 %v442_v17, %s1743_s13  ;;  %v1348_v26 = vpop.f32.mrb[7].mxu0 }
 0x177   : > { %880 = vrot.lane.b32.xlu1 %v2034_v24, %s1745_s22  ;;  %877 = vrot.lane.b32.xlu0 %v2034_v24, %s1744_s16  ;;  %s1583_s16 = scalar_lea.vmem %s2087_s20, 256  ;;  %s1748_s22 = smov [#allocation11]  }
 0x178   : > { %p1584_p5 = scmp.ne.s32.totalorder %s2087_s20, %s1583_s16  ;;  %s1587_s8 = sshll.u32 %s1748_s22, 4  ;;  %s1588_s8 = int_to_ptr.vmem [resolvable:$false] %s1587_s8 }
 0x179   : > { %s1589_s23 = scalar_lea.vmem %s1588_s8, 512  ;;  %p1590_p0 = scmp.lt.s32.totalorder %s2087_s20, %s1588_s8 }
 0x17a   : > { %p1585_p7 = pnand %p1584_p5, %p1951_p10  ;;  %p1591_p2 = scmp.lt.s32.totalorder %s1589_s23, %s1583_s16 }
 0x17b   : > { %883 = vrot.lane.b32.xlu0 %v2034_v24, %s1743_s13  ;;  %s2107_s13 = scalar_lea.sflag [#allocation12], %s1035_s12 }
 0x17c   : > { %p1586_p9 = pneg %p1585_p7  ;;  %p1592_p4 = por %p1591_p2, %p1590_p0 }
 0x17e   : > { %p1593_p8 = pnand %p1592_p4, %p1586_p9 }
 0x1dd   : > { %v730_v34 = vpop.permute.xlu1 %729  ;;  %v724_v35 = vpop.permute.xlu0 %723 }
 0x1de   : > { %v748_v38 = vcombine.low %v724_v35, %v730_v34  ;;  %v749_v39 = vcombine.high %v724_v35, %v730_v34 }
 0x1e0   : > { %v756_v45 = vrot.slane %v748_v38, %v2039_v37  ;;  %v763_v46 = vrot.slane %v749_v39, %v2039_v37 }
 0x1e1   : > { %v727_v40 = vpop.permute.xlu0 %726  ;;  %v569_v41 = vpop.permute.xlu1 %568 }
 0x1e2   : > { %v732_v42 = vcombine.low %v502_v12, %v727_v40  ;;  %v733_v43 = vcombine.high %v502_v12, %v727_v40 }
 0x1e4   : > { %v740_v47 = vrot.slane %v732_v42, %v2039_v37  ;;  %v747_v48 = vrot.slane %v733_v43, %v2039_v37 }
 0x1e5   : > { %v572_v49 = vpop.permute.xlu0 %571  ;;  %v575_v50 = vpop.permute.xlu1 %574 }
 0x1e6   : > { %v764_v51 = vcombine.low %v740_v47, %v756_v45  ;;  %v765_v52 = vcombine.high %v740_v47, %v756_v45  ;;  %v780_v53 = vcombine.low %v747_v48, %v763_v46  ;;  %v781_v54 = vcombine.high %v747_v48, %v763_v46 }
 0x1e7   : > { %v577_v55 = vcombine.low %v442_v17, %v572_v49  ;;  %v578_v56 = vcombine.high %v442_v17, %v572_v49  ;;  %v593_v57 = vcombine.low %v569_v41, %v575_v50  ;;  %v594_v58 = vcombine.high %v569_v41, %v575_v50 }
 0x1e8   : > { %v772_v59 = vrot.slane %v764_v51, %v2041_v44  ;;  %v779_v60 = vrot.slane %v765_v52, %v2041_v44  ;;  %v788_v61 = vrot.slane %v780_v53, %v2041_v44  ;;  %v795_v62 = vrot.slane %v781_v54, %v2041_v44 }
 0x1e9   : > { %v585_v63 = vrot.slane %v577_v55, %v2039_v37  ;;  %v592_v0 = vrot.slane %v578_v56, %v2039_v37  ;;  %v601_v1 = vrot.slane %v593_v57, %v2039_v37  ;;  %v608_v2 = vrot.slane %v594_v58, %v2039_v37  ;;  %v2063_v19 = vpop.permute.xlu0 %877  ;;  %v881_v47 = vpop.permute.xlu1 %880 }
 0x1ea   : > { %v800_v3 = vcombine.low %v772_v59, %v779_v60  ;;  %v1298_v4 = vcombine.high %v772_v59, %v779_v60  ;;  %v816_v5 = vcombine.low %v788_v61, %v795_v62  ;;  %v1299_v6 = vcombine.high %v788_v61, %v795_v62 }
 0x1eb   : > { %v609_v7 = vcombine.low %v585_v63, %v601_v1  ;;  %v610_v8 = vcombine.high %v585_v63, %v601_v1  ;;  %v625_v9 = vcombine.low %v592_v0, %v608_v2  ;;  %v626_v10 = vcombine.high %v592_v0, %v608_v2 }
 0x1ec   : > { %v807_v11 = vrot.slane %v800_v3, %v2039_v37  ;;  %v815_v12 = vrot.slane %v1298_v4, %v2039_v37  ;;  %v823_v13 = vrot.slane %v816_v5, %v2039_v37  ;;  %v831_v14 = vrot.slane %v1299_v6, %v2039_v37 }
 0x1ed   : > { %v617_v15 = vrot.slane %v609_v7, %v2041_v44  ;;  %v624_v16 = vrot.slane %v610_v8, %v2041_v44  ;;  %v633_v17 = vrot.slane %v625_v9, %v2041_v44  ;;  %v640_v18 = vrot.slane %v626_v10, %v2041_v44  ;;  %v884_v48 = vpop.permute.xlu0 %883 }
 0x1ee   : > { %v832_v20 = vcombine.low %v807_v11, %v815_v12  ;;  %v833_v21 = vcombine.high %v807_v11, %v815_v12  ;;  %v848_v22 = vcombine.low %v823_v13, %v831_v14  ;;  %v849_v23 = vcombine.high %v823_v13, %v831_v14 }
 0x1ef   : > { %v645_v25 = vcombine.low %v617_v15, %v624_v16  ;;  %v1296_v26 = vcombine.high %v617_v15, %v624_v16  ;;  %v661_v27 = vcombine.low %v633_v17, %v640_v18  ;;  %v1297_v28 = vcombine.high %v633_v17, %v640_v18 }
 0x1f0   : > { %v840_v29 = vrot.slane %v832_v20, %v2041_v44  ;;  %v847_v30 = vrot.slane %v833_v21, %v2041_v44  ;;  %v856_v31 = vrot.slane %v848_v22, %v2041_v44  ;;  %v863_v32 = vrot.slane %v849_v23, %v2041_v44 }
 0x1f1   : > { %v652_v33 = vrot.slane %v645_v25, %v2039_v37  ;;  %v660_v34 = vrot.slane %v1296_v26, %v2039_v37  ;;  %v668_v35 = vrot.slane %v661_v27, %v2039_v37  ;;  %v676_v36 = vrot.slane %v1297_v28, %v2039_v37 }
 0x1f2   : > { %v864_v38 = vcombine.low %v840_v29, %v856_v31  ;;  %v865_v39 = vcombine.high %v840_v29, %v856_v31  ;;  %v866_v40 = vcombine.low %v847_v30, %v863_v32  ;;  %v867_v41 = vcombine.high %v847_v30, %v863_v32 }
 0x1f3   : > { %v677_v42 = vcombine.low %v652_v33, %v660_v34  ;;  %v678_v43 = vcombine.high %v652_v33, %v660_v34  ;;  %v693_v45 = vcombine.low %v668_v35, %v676_v36  ;;  %v694_v46 = vcombine.high %v668_v35, %v676_v36 }
 0x1f4   : > { %v868_v49 = vpack.c.bf16 %v864_v38, %v864_v38  ;;  %v869_v50 = vpack.c.bf16 %v865_v39, %v865_v39  ;;  %v870_v51 = vpack.c.bf16 %v866_v40, %v866_v40  ;;  %v871_v52 = vpack.c.bf16 %v867_v41, %v867_v41 }
 0x1f5   : > { %v685_v53 = vrot.slane %v677_v42, %v2041_v44  ;;  %v692_v54 = vrot.slane %v678_v43, %v2041_v44  ;;  %v701_v55 = vrot.slane %v693_v45, %v2041_v44  ;;  %v708_v56 = vrot.slane %v694_v46, %v2041_v44 }
 0x1f6   : > { %v886_v57 = vcombine.low %v2034_v24, %v881_v47  ;;  %v887_v58 = vcombine.high %v2034_v24, %v881_v47  ;;  %v902_v59 = vcombine.low %v2063_v19, %v884_v48  ;;  %v903_v60 = vcombine.high %v2063_v19, %v884_v48  ;;  %872 = vst.msk [vmem:[%s369_s18] sm:$0xf] %vm717_vm2, %v868_v49 }
 0x1f7   : > { %873 = vst.msk [vmem:[%s369_s18 + $0x4] sm:$0xf] %vm717_vm2, %v869_v50  ;;  %874 = vst.msk [vmem:[%s369_s18 + $0x8] sm:$0xf] %vm717_vm2, %v870_v51  ;;  %v709_v61 = vcombine.low %v685_v53, %v701_v55  ;;  %v710_v24 = vcombine.high %v685_v53, %v701_v55  ;;  %v711_v62 = vcombine.low %v692_v54, %v708_v56 }
 0x1f8   : > { %875 = vst.msk [vmem:[%s369_s18 + $0xc] sm:$0xf] %vm717_vm2, %v871_v52  ;;  %v712_v63 = vcombine.high %v692_v54, %v708_v56 }
 0x1f9   : > { %1596 = shalt.err (!%p1593_p8)
}
 0x1fa   : > { %s1597_s30 = scalar_lea.hbm %s2085_s11, 256  ;;  %s1601_s27 = scalar_lea.hbm %s2264_s6, 512 }
 0x1fb   : > { %p1598_p1 = scmp.ne.s32.totalorder %s2085_s11, %s1597_s30  ;;  %p1602_p11 = scmp.lt.u32.totalorder %s2085_s11, %s2264_s6 }
 0x1fc   : > { %p1603_p6 = scmp.lt.u32.totalorder %s1601_s27, %s1597_s30  ;;  %p1605_p5 = scmp.lt.u32.totalorder %s1597_s30, %s2085_s11 }
 0x1fd   : > { %p1599_p12 = pnand %p1598_p1, %p1951_p10 }
 0x1fe   : > { %p1604_p3 = por %p1603_p6, %p1602_p11 }
 0x1ff   : > { %p1600_p13 = pneg %p1599_p12 }
 0x200   : > { %p1606_p7 = por %p1605_p5, %p1604_p3 }
 0x202   : > { %p1607_p9 = pnand %p1606_p7, %p1600_p13 }
 0x204   : > { %1610 = shalt.err (!%p1607_p9)
}
 0x205   : > { %s1749_s16 = smov 64   ;;  %s1750_s8 = smov 4   ;;  %v894_v0 = vrot.slane %v886_v57, %v2039_v37  ;;  %v901_v1 = vrot.slane %v887_v58, %v2039_v37  ;;  %v910_v2 = vrot.slane %v902_v59, %v2039_v37  ;;  %v917_v3 = vrot.slane %v903_v60, %v2039_v37 }
 0x206   : > { %1364 = dma.vmem_to_hbm [thread:$0]  (%p1951_p10), %s2087_s20, 256, %s2085_s11, %s2107_s13, %s1749_s16, %s1749_s16, %s1750_s8   ;;  %v713_v4 = vpack.c.bf16 %v709_v61, %v709_v61  ;;  %v714_v5 = vpack.c.bf16 %v710_v24, %v710_v24  ;;  %v715_v6 = vpack.c.bf16 %v711_v62, %v711_v62  ;;  %v716_v7 = vpack.c.bf16 %v712_v63, %v712_v63 }
 0x207   : > { %s2142_s20 = scalar_lea.hbm %s2263_s5, %s2078_s10  ;;  %v918_v8 = vcombine.low %v894_v0, %v910_v2  ;;  %v919_v9 = vcombine.high %v894_v0, %v910_v2  ;;  %v934_v10 = vcombine.low %v901_v1, %v917_v3  ;;  %v935_v11 = vcombine.high %v901_v1, %v917_v3  ;;  %s1031_s11 = scalar_lea.sflag [#allocation4], %s2006_s7 }
 0x208   : > { %718 = vst.msk [vmem:[%s2102_s15] sm:$0xf] %vm717_vm2, %v713_v4  ;;  %719 = vst.msk [vmem:[%s2102_s15 + $0x4] sm:$0xf] %vm717_vm2, %v714_v5  ;;  %s1611_s12 = scalar_lea.vmem %s2146_s19, 256  ;;  %s1751_s18 = smov [#allocation10]  }
 0x209   : > { %720 = vst.msk [vmem:[%s2102_s15 + $0x8] sm:$0xf] %vm717_vm2, %v715_v6  ;;  %721 = vst.msk [vmem:[%s2102_s15 + $0xc] sm:$0xf] %vm717_vm2, %v716_v7  ;;  %v926_v12 = vrot.slane %v918_v8, %v2041_v44  ;;  %v933_v13 = vrot.slane %v919_v9, %v2041_v44  ;;  %v942_v14 = vrot.slane %v934_v10, %v2041_v44  ;;  %p1612_p0 = scmp.ne.s32.totalorder %s2146_s19, %s1611_s12  ;;  %s1615_s27 = sshll.u32 %s1751_s18, 4  ;;  %s1616_s27 = int_to_ptr.vmem [resolvable:$false] %s1615_s27 }
 0x20a   : > { %v949_v15 = vrot.slane %v935_v11, %v2041_v44  ;;  %s1617_s9 = scalar_lea.vmem %s1616_s27, 512  ;;  %p1618_p8 = scmp.lt.s32.totalorder %s2146_s19, %s1616_s27 }
 0x20b   : > { %p1613_p2 = pnand %p1612_p0, %p1951_p10  ;;  %p1619_p1 = scmp.lt.s32.totalorder %s1617_s9, %s1611_s12 }
 0x20d   : > { %p1614_p4 = pneg %p1613_p2  ;;  %p1620_p12 = por %p1619_p1, %p1618_p8 }
 0x20f   : > { %p1621_p13 = pnand %p1620_p12, %p1614_p4 }
 0x211   : > { %1624 = shalt.err (!%p1621_p13)
}
 0x212   : > { %s1625_s15 = scalar_lea.hbm %s2142_s20, 256  ;;  %s1629_s30 = scalar_lea.hbm %s2263_s5, 512 }
 0x213   : > { %p1626_p11 = scmp.ne.s32.totalorder %s2142_s20, %s1625_s15  ;;  %p1630_p5 = scmp.lt.u32.totalorder %s2142_s20, %s2263_s5 }
 0x214   : > { %p1631_p7 = scmp.lt.u32.totalorder %s1629_s30, %s1625_s15  ;;  %p1633_p0 = scmp.lt.u32.totalorder %s1625_s15, %s2142_s20 }
 0x215   : > { %p1627_p6 = pnand %p1626_p11, %p1951_p10 }
 0x216   : > { %p1632_p9 = por %p1631_p7, %p1630_p5 }
 0x217   : > { %p1628_p3 = pneg %p1627_p6 }
 0x218   : > { %p1634_p2 = por %p1633_p0, %p1632_p9 }
 0x21a   : > { %p1635_p4 = pnand %p1634_p2, %p1628_p3 }
 0x21c   : > { %1638 = shalt.err (!%p1635_p4)
}
 0x21d   : > { %1363 = dma.vmem_to_hbm [thread:$0]  (%p1951_p10), %s2146_s19, 256, %s2142_s20, %s1031_s11, %s1749_s16, %s1749_s16, %s1750_s8   ;;  %v954_v16 = vcombine.low %v926_v12, %v933_v13  ;;  %v1300_v17 = vcombine.high %v926_v12, %v933_v13  ;;  %v970_v18 = vcombine.low %v942_v14, %v949_v15  ;;  %v1301_v19 = vcombine.high %v942_v14, %v949_v15 }
 0x21e   : > { %s376_s7 = scalar_lea.vmem [#allocation13], %s2066_s17  ;;  %s2290_s12 = sld [smem:[#allocation21_spill]] }
 0x21f   : > { %v961_v20 = vrot.slane %v954_v16, %v2039_v37  ;;  %v969_v21 = vrot.slane %v1300_v17, %v2039_v37  ;;  %v977_v22 = vrot.slane %v970_v18, %v2039_v37  ;;  %v985_v23 = vrot.slane %v1301_v19, %v2039_v37  ;;  %s1089_s19 = sshll.u32 %s376_s7, 4  ;;  %s2202_s19 = int_to_ptr.vmem [resolvable:$true] %s1089_s19 }
 0x220   : > { %s1639_s17 = scalar_lea.vmem %s2202_s19, 256 }
 0x221   : > { %v986_v25 = vcombine.low %v961_v20, %v969_v21  ;;  %v987_v26 = vcombine.high %v961_v20, %v969_v21  ;;  %v1002_v27 = vcombine.low %v977_v22, %v985_v23  ;;  %v1003_v28 = vcombine.high %v977_v22, %v985_v23  ;;  %p1640_p8 = scmp.ne.s32.totalorder %s2202_s19, %s1639_s17 }
 0x223   : > { %v994_v29 = vrot.slane %v986_v25, %v2041_v44  ;;  %v1001_v30 = vrot.slane %v987_v26, %v2041_v44  ;;  %v1010_v31 = vrot.slane %v1002_v27, %v2041_v44  ;;  %v1017_v32 = vrot.slane %v1003_v28, %v2041_v44  ;;  %p1641_p1 = pnand %p1640_p8, %p1951_p10 }
 0x224   : > { %s2200_s9 = scalar_lea.hbm %s2290_s12, %s2078_s10  ;;  %s1752_s10 = smov [#allocation13]  }
 0x225   : > { %v1018_v33 = vcombine.low %v994_v29, %v1010_v31  ;;  %v1019_v34 = vcombine.high %v994_v29, %v1010_v31  ;;  %v1020_v35 = vcombine.low %v1001_v30, %v1017_v32  ;;  %v1021_v37 = vcombine.high %v1001_v30, %v1017_v32  ;;  %p1642_p12 = pneg %p1641_p1  ;;  %s1643_s15 = sshll.u32 %s1752_s10, 4  ;;  %s1644_s15 = int_to_ptr.vmem [resolvable:$false] %s1643_s15 }
 0x226   : > { %s1645_s22 = scalar_lea.vmem %s1644_s15, 512  ;;  %p1646_p13 = scmp.lt.s32.totalorder %s2202_s19, %s1644_s15 }
 0x227   : > { %v1022_v36 = vpack.c.bf16 %v1018_v33, %v1018_v33  ;;  %v1023_v38 = vpack.c.bf16 %v1019_v34, %v1019_v34  ;;  %v1024_v39 = vpack.c.bf16 %v1020_v35, %v1020_v35  ;;  %v1025_v40 = vpack.c.bf16 %v1021_v37, %v1021_v37  ;;  %p1647_p11 = scmp.lt.s32.totalorder %s1645_s22, %s1639_s17 }
 0x229   : > { %1026 = vst.msk [vmem:[%s376_s7] sm:$0xf] %vm717_vm2, %v1022_v36  ;;  %1027 = vst.msk [vmem:[%s376_s7 + $0x4] sm:$0xf] %vm717_vm2, %v1023_v38  ;;  %p1648_p6 = por %p1647_p11, %p1646_p13 }
 0x22a   : > { %1028 = vst.msk [vmem:[%s376_s7 + $0x8] sm:$0xf] %vm717_vm2, %v1024_v39  ;;  %1029 = vst.msk [vmem:[%s376_s7 + $0xc] sm:$0xf] %vm717_vm2, %v1025_v40 }
 0x22b   : > { %p1649_p3 = pnand %p1648_p6, %p1642_p12 }
 0x22d   : > { %1652 = shalt.err (!%p1649_p3)
}
 0x22e   : > { %s1653_s23 = scalar_lea.hbm %s2200_s9, 256  ;;  %s1657_s27 = scalar_lea.hbm %s2290_s12, 512 }
 0x22f   : > { %p1654_p5 = scmp.ne.s32.totalorder %s2200_s9, %s1653_s23  ;;  %p1658_p0 = scmp.lt.u32.totalorder %s2200_s9, %s2290_s12 }
 0x230   : > { %p1659_p2 = scmp.lt.u32.totalorder %s1657_s27, %s1653_s23  ;;  %p1661_p8 = scmp.lt.u32.totalorder %s1653_s23, %s2200_s9 }
 0x231   : > { %p1655_p7 = pnand %p1654_p5, %p1951_p10 }
 0x232   : > { %p1660_p4 = por %p1659_p2, %p1658_p0 }
 0x233   : > { %p1656_p9 = pneg %p1655_p7 }
 0x234   : > { %p1662_p1 = por %p1661_p8, %p1660_p4 }
 0x236   : > { %p1663_p12 = pnand %p1662_p1, %p1656_p9 }
 0x238   : > { %1666 = shalt.err (!%p1663_p12)
}
 0x239   : > { %1365 = dma.vmem_to_hbm [thread:$0]  (%p1951_p10), %s2202_s19, 256, %s2200_s9, %s2107_s13, %s1749_s16, %s1749_s16, %s1750_s8  }
 0x23a PF: > { %s2291_s11 = sld [smem:[#allocation19_spill]]  ;;  %s2292_s17 = sld [smem:[#allocation20_spill]] }
 0x23b   : > { %p2294_p11 = scmp.ge.s32.totalorder %s1733_s29, 2 }
 0x240   : > { %s1104_s10 = sand.u32 1, %s2291_s11   ;;  %p2293_p13 = scmp.ne.s32.totalorder %s2292_s17, 0 }
 0x241   : > { %s1105_s15 = scalar_lea.sflag [#allocation4], %s1104_s10 }
 0x242   : > { %p1384_p6 = pnand %p2294_p11, %p2293_p13 }
 0x244   : > { %1704 = dma.done.wait (!%p1384_p6), %s1105_s15, 256  }
 0x245   : > { %1706 = vsyncadd (!%p1384_p6), %s1105_s15, 4294967040  ;;  %s2295_s24 = sadd.s32 4294967294, %s1733_s29  }
 0x246   : > { %s1113_s22 = sand.u32 1, %s2295_s24  }
 0x247   : > { %s1114_s23 = scalar_lea.sflag [#allocation12], %s1113_s22 }
 0x248   : > { %1708 = dma.done.wait (!%p1384_p6), %s1114_s23, 512  }
 0x249   : > { %1710 = vsyncadd (!%p1384_p6), %s1114_s23, 4294966784  ;;  %s29_s29 = sadd.s32 1, %s1733_s29   ;;  %s2296_s24 = smov %s1717_s25 }
 0x24a   : > { %p26_p10 = scmp.ge.s32.totalorder %s29_s29, 4   ;;  %s2297_s25 = smov %s1721_s26 }
 0x24b   : > { %s2298_s26 = smov %s1963_s21  ;;  %s2299_s27 = smov %s1729_s28 }
 0x24c   : > { %s2300_s28 = smov %s2302_s14  ;;  %28 = sbr.rel (!%p26_p10) target bundleno = 12 (0xc), region = 129 }
 0x253   :  { %1128 = vsyncpa [#allocation3], 1 }
 0x254   :  { %1130 = vsyncpa [#allocation3 + $0x1], 1 }
 0x255   :  { %1131 = vsyncpa [#allocation6], 1 }
 0x256   :  { %1132 = vsyncpa [#allocation9], 1 }
 0x257   :  { %1133 = vsyncpa [#allocation4], 1 }
 0x258   :  { %1135 = vsyncpa [#allocation4 + $0x1], 1 }
 0x259   :  { %1136 = vsyncpa [#allocation12], 1 }
 0x25a   :  { %1138 = vsyncpa [#allocation12 + $0x1], 1 }

</bundles_post_ra>
